<compile_context>
chip_gen: v5e
topology: v5e:2x2
jax: 0.10.0
libtpu: 0.0.40
codegen_flags: <defaults>
</compile_context>

<pallas_src>
import functools

import jax
import jax.numpy as jnp
from jax.experimental import pallas as pl
from jax.experimental.pallas import tpu as pltpu


def gru_chunk_kernel(ig_ref, whh_ref, bhh_ref, out_ref, h_ref):
    """One grid step = one (batch tile, time chunk).

    ig_ref : (Tc, Bt, 3Hp) precomputed input projections x @ W_ih + b_ih (f32)
    whh_ref: (Hp, 3Hp)     fused recurrent weights, gate order [r | z | n]
    bhh_ref: (1, 3Hp)      fused recurrent bias
    out_ref: (Tc, Bt, Hp)  hidden state for every timestep in the chunk
    h_ref  : (Bt, Hp)      carried hidden state (VMEM scratch, persists across chunks)
    """
    Hp = h_ref.shape[-1]
    Tc = ig_ref.shape[0]

    # Zero h0 at the first time chunk of each batch tile (the PyTorch module feeds
    # zeros via init_lstm_states -- despite the name it is the GRU's h0).
    @pl.when(pl.program_id(1) == 0)
    def _():
        h_ref[...] = jnp.zeros_like(h_ref)

    whh = whh_ref[...]
    bhh = bhh_ref[...]

    def step(i, h):
        gi = ig_ref[i]                                                     # (Bt, 3Hp)
        hg = jnp.dot(h, whh, preferred_element_type=jnp.float32) + bhh     # (Bt, 3Hp)
        # Lane-aligned static slices (Hp is a multiple of 128).
        r = jax.nn.sigmoid(gi[:, :Hp] + hg[:, :Hp])
        z = jax.nn.sigmoid(gi[:, Hp:2 * Hp] + hg[:, Hp:2 * Hp])
        n = jnp.tanh(gi[:, 2 * Hp:] + r * hg[:, 2 * Hp:])
        h_new = n + z * (h - n)                                            # == (1-z)n + zh
        out_ref[i] = h_new.astype(out_ref.dtype)
        return h_new

    # Short fixed trip count -> unroll for LLO scheduler visibility.
    h_ref[...] = jax.lax.fori_loop(0, Tc, step, h_ref[...], unroll=True)


def _round_up(x, m):
    return ((x + m - 1) // m) * m


def _pad_gate_axis(a, h, hp):
    """Pad the fused [r|z|n] gate axis (last dim, 3h) to 3hp with per-gate zeros."""
    if hp == h:
        return a
    lead = a.shape[:-1]
    a3 = a.reshape(*lead, 3, h)
    a3 = jnp.pad(a3, [(0, 0)] * len(lead) + [(0, 0), (0, hp - h)])
    return a3.reshape(*lead, 3 * hp)


@functools.partial(jax.jit, static_argnames=("time_chunk",))
def gru_encoder_forward(x_bse, w_ih, w_hh, b_ih, b_hh, *, time_chunk=16):
    """x_bse: (B, S, E). Fused params: w_ih (E,3H), w_hh (H,3H), b_ih/b_hh (1,3H).

    Returns gru_out: (B, S, H), matching nn.GRU(batch_first=True) with h0 = zeros.
    """
    B, S, E = x_bse.shape
    H = w_hh.shape[0]

    # Pad the hidden/gate axis to a multiple of the lane width. Padded weight columns
    # and rows are zero, so padded hidden lanes stay exactly zero through the
    # recurrence (gi=0, hg=0 -> z=0.5, n=0 -> h_pad stays 0) and are sliced off.
    Hp = _round_up(H, 128)
    w_ih_p = _pad_gate_axis(w_ih, H, Hp)                                  # (E, 3Hp)
    w_hh_p = _pad_gate_axis(jnp.pad(w_hh, ((0, Hp - H), (0, 0))), H, Hp)  # (Hp, 3Hp)
    b_ih_p = _pad_gate_axis(b_ih, H, Hp)                                  # (1, 3Hp)
    b_hh_p = _pad_gate_axis(b_hh, H, Hp)                                  # (1, 3Hp)

    # Hoisted, fully parallel input projection: one big MXU matmul over all B*S
    # tokens, written directly in time-major (S, B, 3Hp) layout.
    gates_x = jnp.einsum(
        "bse,eg->sbg", x_bse.astype(jnp.float32), w_ih_p,
        preferred_element_type=jnp.float32,
    ) + b_ih_p  # (S, B, 3Hp)

    # Pad time to a multiple of the chunk and batch to a multiple of 8 (sublane
    # width). Because the recurrence runs forward in time, padded timesteps never
    # contaminate real outputs; tail padding is sliced off below.
    Tc = max(1, min(time_chunk, S))
    S_pad = _round_up(S, Tc)
    B_pad = _round_up(B, 8)
    gates_x = jnp.pad(gates_x, ((0, S_pad - S), (0, B_pad - B), (0, 0)))

    # Batch tiling: split into 2 tiles when the batch allows it -> leading "parallel"
    # grid axis (spreads across the two TensorCores on v7x; harmless elsewhere).
    Bt = B_pad // 2 if B_pad % 16 == 0 else B_pad
    nb = B_pad // Bt
    nt = S_pad // Tc

    out_sbh = pl.pallas_call(
        gru_chunk_kernel,
        out_shape=jax.ShapeDtypeStruct((S_pad, B_pad, Hp), x_bse.dtype),
        grid_spec=pltpu.PrefetchScalarGridSpec(
            num_scalar_prefetch=0,
            grid=(nb, nt),
            in_specs=[
                pl.BlockSpec((Tc, Bt, 3 * Hp), lambda b, t: (t, b, 0)),  # x·W_ih + b_ih
                # Constant index maps: weights/bias stay resident, no re-DMA per step.
                pl.BlockSpec((Hp, 3 * Hp), lambda b, t: (0, 0)),         # W_hh fused
                pl.BlockSpec((1, 3 * Hp), lambda b, t: (0, 0)),          # b_hh fused
            ],
            out_specs=pl.BlockSpec((Tc, Bt, Hp), lambda b, t: (t, b, 0)),
            scratch_shapes=[pltpu.VMEM((Bt, Hp), jnp.float32)],          # carried h
        ),
        compiler_params=pltpu.CompilerParams(
            dimension_semantics=("parallel", "arbitrary"),  # batch parallel, time serial
        ),
    )(gates_x, w_hh_p, b_hh_p)

    # Strip padding and return batch_first (B, S, H).
    return jnp.transpose(out_sbh[:S, :B, :H], (1, 0, 2))


def init_gru_params(key, emb_dim, hidden_dim):
    """Uniform(-1/sqrt(H), 1/sqrt(H)) init matching nn.GRU, in fused kernel layout.

    Gate order along the 3H axis is [r | z | n]:
      w_ih: (E, 3H)  == weight_ih_l0.T      w_hh: (H, 3H)  == weight_hh_l0.T
      b_ih: (1, 3H)                          b_hh: (1, 3H)
    """
    k = 1.0 / jnp.sqrt(jnp.float32(hidden_dim))
    k1, k2, k3, k4 = jax.random.split(key, 4)
    w_ih = jax.random.uniform(k1, (emb_dim, 3 * hidden_dim), jnp.float32, -k, k)
    w_hh = jax.random.uniform(k2, (hidden_dim, 3 * hidden_dim), jnp.float32, -k, k)
    b_ih = jax.random.uniform(k3, (1, 3 * hidden_dim), jnp.float32, -k, k)
    b_hh = jax.random.uniform(k4, (1, 3 * hidden_dim), jnp.float32, -k, k)
    return w_ih, w_hh, b_ih, b_hh


def gru_reference(x_bse, w_ih, w_hh, b_ih, b_hh):
    """Pure-JAX reference (lax.scan) with identical semantics, for validation."""
    B, S, E = x_bse.shape
    H = w_hh.shape[0]
    x_sbe = jnp.transpose(x_bse, (1, 0, 2))

    def step(h, x):
        gi = x @ w_ih + b_ih
        hg = h @ w_hh + b_hh
        r = jax.nn.sigmoid(gi[:, :H] + hg[:, :H])
        z = jax.nn.sigmoid(gi[:, H:2 * H] + hg[:, H:2 * H])
        n = jnp.tanh(gi[:, 2 * H:] + r * hg[:, 2 * H:])
        h_new = (1.0 - z) * n + z * h
        return h_new, h_new

    h0 = jnp.zeros((B, H), jnp.float32)
    _, out_sbh = jax.lax.scan(step, h0, x_sbe)
    return jnp.transpose(out_sbh, (1, 0, 2))


if __name__ == "__main__":
    # Small shapes consistent with the module's forward: inp is (batch, seq, emb_dim).
    B, S, E, H = 2, 8, 16, 32
    key = jax.random.PRNGKey(0)
    kx, kp = jax.random.split(key)
    x = jax.random.normal(kx, (B, S, E), jnp.float32)
    w_ih, w_hh, b_ih, b_hh = init_gru_params(kp, E, H)

    out = gru_encoder_forward(x, w_ih, w_hh, b_ih, b_hh)
    out = jax.block_until_ready(out)

    ref = gru_reference(x, w_ih, w_hh, b_ih, b_hh)
    assert out.shape == (B, S, H)
    assert jnp.allclose(out, ref, atol=1e-4, rtol=1e-4), "mismatch vs pure-JAX reference"

    # TODO(synk): bidirectional=True branch and the optional embedding lookup are not
    # exercised (module defaults: bidirectional=False, embedding=None).
    print("KERNEL_OK")
</pallas_src>

<mosaic_0001>
module attributes {stable_mosaic.version = 11 : i64} {
  func.func @gru_chunk_kernel(%arg0: i32, %arg1: i32, %arg2: memref<8x8x384xf32, #tpu.memory_space<vmem>>, %arg3: memref<128x384xf32, #tpu.memory_space<vmem>>, %arg4: memref<1x384xf32, #tpu.memory_space<vmem>>, %arg5: memref<8x8x128xf32, #tpu.memory_space<vmem>>, %arg6: memref<8x128xf32, #tpu.memory_space<vmem>>) attributes {dimension_semantics = [#tpu.dimension_semantics<parallel>, #tpu.dimension_semantics<arbitrary>], iteration_bounds = array<i64: 1, 1>, scalar_prefetch = 0 : i64, scratch_operands = 1 : i64, tpu.core_type = #tpu.core_type<tc>, window_params = [{transform_indices = @transform_0, window_bounds = array<i64: 8, 8, 384>}, {pipeline_mode = #tpu.pipeline_mode<synchronous>, transform_indices = @transform_1, window_bounds = array<i64: 128, 384>}, {pipeline_mode = #tpu.pipeline_mode<synchronous>, transform_indices = @transform_2, window_bounds = array<i64: 1, 384>}, {transform_indices = @transform_3, window_bounds = array<i64: 8, 8, 128>}]} {
    %c0_i32 = arith.constant 0 : i32
    %0 = arith.cmpi eq, %arg1, %c0_i32 : i32
    %1 = arith.extui %0 : i1 to i32
    %c0_i32_0 = arith.constant 0 : i32
    %2 = arith.cmpi ne, %1, %c0_i32_0 : i32
    scf.if %2 {
      %cst_64 = arith.constant 0.000000e+00 : f32
      %279 = vector.broadcast %cst_64 : f32 to vector<8x128xf32>
      %c0_65 = arith.constant 0 : index
      %c0_66 = arith.constant 0 : index
      %280 = vector.load %arg6[%c0_65, %c0_66] : memref<8x128xf32, #tpu.memory_space<vmem>>, vector<8x128xf32>
      tpu.vector_store %arg6[%c0_65, %c0_66], %279 {strides = array<i32>} : memref<8x128xf32, #tpu.memory_space<vmem>>, vector<8x128xf32>,
    } else {
    }
    %c0 = arith.constant 0 : index
    %c0_1 = arith.constant 0 : index
    %3 = vector.load %arg3[%c0, %c0_1] : memref<128x384xf32, #tpu.memory_space<vmem>>, vector<128x384xf32>
    %c0_2 = arith.constant 0 : index
    %c0_3 = arith.constant 0 : index
    %4 = vector.load %arg4[%c0_2, %c0_3] : memref<1x384xf32, #tpu.memory_space<vmem>>, vector<1x384xf32>
    %c0_4 = arith.constant 0 : index
    %c0_5 = arith.constant 0 : index
    %5 = vector.load %arg6[%c0_4, %c0_5] : memref<8x128xf32, #tpu.memory_space<vmem>>, vector<8x128xf32>
    %c0_i32_6 = arith.constant 0 : i32
    %6 = arith.index_cast %c0_i32_6 : i32 to index
    %c0_7 = arith.constant 0 : index
    %c0_8 = arith.constant 0 : index
    %7 = vector.load %arg2[%6, %c0_7, %c0_8] : memref<8x8x384xf32, #tpu.memory_space<vmem>>, vector<1x8x384xf32>
    %8 = vector.shape_cast %7 : vector<1x8x384xf32> to vector<8x384xf32>
    %cst = arith.constant dense<0.000000e+00> : vector<8x384xf32>
    %9 = tpu.matmul %5, %3, %cst {dimension_numbers = #tpu.dot_dimension_numbers<[1], [0], [0], [1], [0, 0, 1, 1], [], []>} : vector<8x128xf32>, vector<128x384xf32>, vector<8x384xf32> -> vector<8x384xf32>
    %10 = vector.broadcast %4 : vector<1x384xf32> to vector<8x384xf32>
    %11 = arith.addf %9, %10 : vector<8x384xf32>
    %12 = vector.extract_strided_slice %8 {offsets = [0, 0], sizes = [8, 128], strides = [1, 1]} : vector<8x384xf32> to vector<8x128xf32>
    %13 = vector.extract_strided_slice %11 {offsets = [0, 0], sizes = [8, 128], strides = [1, 1]} : vector<8x384xf32> to vector<8x128xf32>
    %14 = arith.addf %12, %13 : vector<8x128xf32>
    %15 = arith.negf %14 : vector<8x128xf32>
    %16 = math.exp %15 : vector<8x128xf32>
    %cst_9 = arith.constant 1.000000e+00 : f32
    %17 = vector.broadcast %cst_9 : f32 to vector<8x128xf32>
    %18 = arith.addf %17, %16 : vector<8x128xf32>
    %19 = arith.divf %17, %18 : vector<8x128xf32>
    %20 = vector.extract_strided_slice %8 {offsets = [0, 128], sizes = [8, 128], strides = [1, 1]} : vector<8x384xf32> to vector<8x128xf32>
    %21 = vector.extract_strided_slice %11 {offsets = [0, 128], sizes = [8, 128], strides = [1, 1]} : vector<8x384xf32> to vector<8x128xf32>
    %22 = arith.addf %20, %21 : vector<8x128xf32>
    %23 = arith.negf %22 : vector<8x128xf32>
    %24 = math.exp %23 : vector<8x128xf32>
    %cst_10 = arith.constant 1.000000e+00 : f32
    %25 = vector.broadcast %cst_10 : f32 to vector<8x128xf32>
    %26 = arith.addf %25, %24 : vector<8x128xf32>
    %27 = arith.divf %25, %26 : vector<8x128xf32>
    %28 = vector.extract_strided_slice %8 {offsets = [0, 256], sizes = [8, 128], strides = [1, 1]} : vector<8x384xf32> to vector<8x128xf32>
    %29 = vector.extract_strided_slice %11 {offsets = [0, 256], sizes = [8, 128], strides = [1, 1]} : vector<8x384xf32> to vector<8x128xf32>
    %30 = arith.mulf %19, %29 : vector<8x128xf32>
    %31 = arith.addf %28, %30 : vector<8x128xf32>
    %32 = math.tanh %31 : vector<8x128xf32>
    %33 = arith.subf %5, %32 : vector<8x128xf32>
    %34 = arith.mulf %27, %33 : vector<8x128xf32>
    %35 = arith.addf %32, %34 : vector<8x128xf32>
    %36 = arith.index_cast %c0_i32_6 : i32 to index
    %c0_11 = arith.constant 0 : index
    %c0_12 = arith.constant 0 : index
    %37 = vector.load %arg5[%36, %c0_11, %c0_12] : memref<8x8x128xf32, #tpu.memory_space<vmem>>, vector<1x8x128xf32>
    %38 = vector.shape_cast %37 : vector<1x8x128xf32> to vector<8x128xf32>
    %39 = vector.shape_cast %35 : vector<8x128xf32> to vector<1x8x128xf32>
    tpu.vector_store %arg5[%36, %c0_11, %c0_12], %39 {strides = array<i32>} : memref<8x8x128xf32, #tpu.memory_space<vmem>>, vector<1x8x128xf32>,
    %c1_i32 = arith.constant 1 : i32
    %40 = arith.index_cast %c1_i32 : i32 to index
    %c0_13 = arith.constant 0 : index
    %c0_14 = arith.constant 0 : index
    %41 = vector.load %arg2[%40, %c0_13, %c0_14] : memref<8x8x384xf32, #tpu.memory_space<vmem>>, vector<1x8x384xf32>
    %42 = vector.shape_cast %41 : vector<1x8x384xf32> to vector<8x384xf32>
    %cst_15 = arith.constant dense<0.000000e+00> : vector<8x384xf32>
    %43 = tpu.matmul %35, %3, %cst_15 {dimension_numbers = #tpu.dot_dimension_numbers<[1], [0], [0], [1], [0, 0, 1, 1], [], []>} : vector<8x128xf32>, vector<128x384xf32>, vector<8x384xf32> -> vector<8x384xf32>
    %44 = vector.broadcast %4 : vector<1x384xf32> to vector<8x384xf32>
    %45 = arith.addf %43, %44 : vector<8x384xf32>
    %46 = vector.extract_strided_slice %42 {offsets = [0, 0], sizes = [8, 128], strides = [1, 1]} : vector<8x384xf32> to vector<8x128xf32>
    %47 = vector.extract_strided_slice %45 {offsets = [0, 0], sizes = [8, 128], strides = [1, 1]} : vector<8x384xf32> to vector<8x128xf32>
    %48 = arith.addf %46, %47 : vector<8x128xf32>
    %49 = arith.negf %48 : vector<8x128xf32>
    %50 = math.exp %49 : vector<8x128xf32>
    %cst_16 = arith.constant 1.000000e+00 : f32
    %51 = vector.broadcast %cst_16 : f32 to vector<8x128xf32>
    %52 = arith.addf %51, %50 : vector<8x128xf32>
    %53 = arith.divf %51, %52 : vector<8x128xf32>
    %54 = vector.extract_strided_slice %42 {offsets = [0, 128], sizes = [8, 128], strides = [1, 1]} : vector<8x384xf32> to vector<8x128xf32>
    %55 = vector.extract_strided_slice %45 {offsets = [0, 128], sizes = [8, 128], strides = [1, 1]} : vector<8x384xf32> to vector<8x128xf32>
    %56 = arith.addf %54, %55 : vector<8x128xf32>
    %57 = arith.negf %56 : vector<8x128xf32>
    %58 = math.exp %57 : vector<8x128xf32>
    %cst_17 = arith.constant 1.000000e+00 : f32
    %59 = vector.broadcast %cst_17 : f32 to vector<8x128xf32>
    %60 = arith.addf %59, %58 : vector<8x128xf32>
    %61 = arith.divf %59, %60 : vector<8x128xf32>
    %62 = vector.extract_strided_slice %42 {offsets = [0, 256], sizes = [8, 128], strides = [1, 1]} : vector<8x384xf32> to vector<8x128xf32>
    %63 = vector.extract_strided_slice %45 {offsets = [0, 256], sizes = [8, 128], strides = [1, 1]} : vector<8x384xf32> to vector<8x128xf32>
    %64 = arith.mulf %53, %63 : vector<8x128xf32>
    %65 = arith.addf %62, %64 : vector<8x128xf32>
    %66 = math.tanh %65 : vector<8x128xf32>
    %67 = arith.subf %35, %66 : vector<8x128xf32>
    %68 = arith.mulf %61, %67 : vector<8x128xf32>
    %69 = arith.addf %66, %68 : vector<8x128xf32>
    %70 = arith.index_cast %c1_i32 : i32 to index
    %c0_18 = arith.constant 0 : index
    %c0_19 = arith.constant 0 : index
    %71 = vector.load %arg5[%70, %c0_18, %c0_19] : memref<8x8x128xf32, #tpu.memory_space<vmem>>, vector<1x8x128xf32>
    %72 = vector.shape_cast %71 : vector<1x8x128xf32> to vector<8x128xf32>
    %73 = vector.shape_cast %69 : vector<8x128xf32> to vector<1x8x128xf32>
    tpu.vector_store %arg5[%70, %c0_18, %c0_19], %73 {strides = array<i32>} : memref<8x8x128xf32, #tpu.memory_space<vmem>>, vector<1x8x128xf32>,
    %c2_i32 = arith.constant 2 : i32
    %74 = arith.index_cast %c2_i32 : i32 to index
    %c0_20 = arith.constant 0 : index
    %c0_21 = arith.constant 0 : index
    %75 = vector.load %arg2[%74, %c0_20, %c0_21] : memref<8x8x384xf32, #tpu.memory_space<vmem>>, vector<1x8x384xf32>
    %76 = vector.shape_cast %75 : vector<1x8x384xf32> to vector<8x384xf32>
    %cst_22 = arith.constant dense<0.000000e+00> : vector<8x384xf32>
    %77 = tpu.matmul %69, %3, %cst_22 {dimension_numbers = #tpu.dot_dimension_numbers<[1], [0], [0], [1], [0, 0, 1, 1], [], []>} : vector<8x128xf32>, vector<128x384xf32>, vector<8x384xf32> -> vector<8x384xf32>
    %78 = vector.broadcast %4 : vector<1x384xf32> to vector<8x384xf32>
    %79 = arith.addf %77, %78 : vector<8x384xf32>
    %80 = vector.extract_strided_slice %76 {offsets = [0, 0], sizes = [8, 128], strides = [1, 1]} : vector<8x384xf32> to vector<8x128xf32>
    %81 = vector.extract_strided_slice %79 {offsets = [0, 0], sizes = [8, 128], strides = [1, 1]} : vector<8x384xf32> to vector<8x128xf32>
    %82 = arith.addf %80, %81 : vector<8x128xf32>
    %83 = arith.negf %82 : vector<8x128xf32>
    %84 = math.exp %83 : vector<8x128xf32>
    %cst_23 = arith.constant 1.000000e+00 : f32
    %85 = vector.broadcast %cst_23 : f32 to vector<8x128xf32>
    %86 = arith.addf %85, %84 : vector<8x128xf32>
    %87 = arith.divf %85, %86 : vector<8x128xf32>
    %88 = vector.extract_strided_slice %76 {offsets = [0, 128], sizes = [8, 128], strides = [1, 1]} : vector<8x384xf32> to vector<8x128xf32>
    %89 = vector.extract_strided_slice %79 {offsets = [0, 128], sizes = [8, 128], strides = [1, 1]} : vector<8x384xf32> to vector<8x128xf32>
    %90 = arith.addf %88, %89 : vector<8x128xf32>
    %91 = arith.negf %90 : vector<8x128xf32>
    %92 = math.exp %91 : vector<8x128xf32>
    %cst_24 = arith.constant 1.000000e+00 : f32
    %93 = vector.broadcast %cst_24 : f32 to vector<8x128xf32>
    %94 = arith.addf %93, %92 : vector<8x128xf32>
    %95 = arith.divf %93, %94 : vector<8x128xf32>
    %96 = vector.extract_strided_slice %76 {offsets = [0, 256], sizes = [8, 128], strides = [1, 1]} : vector<8x384xf32> to vector<8x128xf32>
    %97 = vector.extract_strided_slice %79 {offsets = [0, 256], sizes = [8, 128], strides = [1, 1]} : vector<8x384xf32> to vector<8x128xf32>
    %98 = arith.mulf %87, %97 : vector<8x128xf32>
    %99 = arith.addf %96, %98 : vector<8x128xf32>
    %100 = math.tanh %99 : vector<8x128xf32>
    %101 = arith.subf %69, %100 : vector<8x128xf32>
    %102 = arith.mulf %95, %101 : vector<8x128xf32>
    %103 = arith.addf %100, %102 : vector<8x128xf32>
    %104 = arith.index_cast %c2_i32 : i32 to index
    %c0_25 = arith.constant 0 : index
    %c0_26 = arith.constant 0 : index
    %105 = vector.load %arg5[%104, %c0_25, %c0_26] : memref<8x8x128xf32, #tpu.memory_space<vmem>>, vector<1x8x128xf32>
    %106 = vector.shape_cast %105 : vector<1x8x128xf32> to vector<8x128xf32>
    %107 = vector.shape_cast %103 : vector<8x128xf32> to vector<1x8x128xf32>
    tpu.vector_store %arg5[%104, %c0_25, %c0_26], %107 {strides = array<i32>} : memref<8x8x128xf32, #tpu.memory_space<vmem>>, vector<1x8x128xf32>,
    %c3_i32 = arith.constant 3 : i32
    %108 = arith.index_cast %c3_i32 : i32 to index
    %c0_27 = arith.constant 0 : index
    %c0_28 = arith.constant 0 : index
    %109 = vector.load %arg2[%108, %c0_27, %c0_28] : memref<8x8x384xf32, #tpu.memory_space<vmem>>, vector<1x8x384xf32>
    %110 = vector.shape_cast %109 : vector<1x8x384xf32> to vector<8x384xf32>
    %cst_29 = arith.constant dense<0.000000e+00> : vector<8x384xf32>
    %111 = tpu.matmul %103, %3, %cst_29 {dimension_numbers = #tpu.dot_dimension_numbers<[1], [0], [0], [1], [0, 0, 1, 1], [], []>} : vector<8x128xf32>, vector<128x384xf32>, vector<8x384xf32> -> vector<8x384xf32>
    %112 = vector.broadcast %4 : vector<1x384xf32> to vector<8x384xf32>
    %113 = arith.addf %111, %112 : vector<8x384xf32>
    %114 = vector.extract_strided_slice %110 {offsets = [0, 0], sizes = [8, 128], strides = [1, 1]} : vector<8x384xf32> to vector<8x128xf32>
    %115 = vector.extract_strided_slice %113 {offsets = [0, 0], sizes = [8, 128], strides = [1, 1]} : vector<8x384xf32> to vector<8x128xf32>
    %116 = arith.addf %114, %115 : vector<8x128xf32>
    %117 = arith.negf %116 : vector<8x128xf32>
    %118 = math.exp %117 : vector<8x128xf32>
    %cst_30 = arith.constant 1.000000e+00 : f32
    %119 = vector.broadcast %cst_30 : f32 to vector<8x128xf32>
    %120 = arith.addf %119, %118 : vector<8x128xf32>
    %121 = arith.divf %119, %120 : vector<8x128xf32>
    %122 = vector.extract_strided_slice %110 {offsets = [0, 128], sizes = [8, 128], strides = [1, 1]} : vector<8x384xf32> to vector<8x128xf32>
    %123 = vector.extract_strided_slice %113 {offsets = [0, 128], sizes = [8, 128], strides = [1, 1]} : vector<8x384xf32> to vector<8x128xf32>
    %124 = arith.addf %122, %123 : vector<8x128xf32>
    %125 = arith.negf %124 : vector<8x128xf32>
    %126 = math.exp %125 : vector<8x128xf32>
    %cst_31 = arith.constant 1.000000e+00 : f32
    %127 = vector.broadcast %cst_31 : f32 to vector<8x128xf32>
    %128 = arith.addf %127, %126 : vector<8x128xf32>
    %129 = arith.divf %127, %128 : vector<8x128xf32>
    %130 = vector.extract_strided_slice %110 {offsets = [0, 256], sizes = [8, 128], strides = [1, 1]} : vector<8x384xf32> to vector<8x128xf32>
    %131 = vector.extract_strided_slice %113 {offsets = [0, 256], sizes = [8, 128], strides = [1, 1]} : vector<8x384xf32> to vector<8x128xf32>
    %132 = arith.mulf %121, %131 : vector<8x128xf32>
    %133 = arith.addf %130, %132 : vector<8x128xf32>
    %134 = math.tanh %133 : vector<8x128xf32>
    %135 = arith.subf %103, %134 : vector<8x128xf32>
    %136 = arith.mulf %129, %135 : vector<8x128xf32>
    %137 = arith.addf %134, %136 : vector<8x128xf32>
    %138 = arith.index_cast %c3_i32 : i32 to index
    %c0_32 = arith.constant 0 : index
    %c0_33 = arith.constant 0 : index
    %139 = vector.load %arg5[%138, %c0_32, %c0_33] : memref<8x8x128xf32, #tpu.memory_space<vmem>>, vector<1x8x128xf32>
    %140 = vector.shape_cast %139 : vector<1x8x128xf32> to vector<8x128xf32>
    %141 = vector.shape_cast %137 : vector<8x128xf32> to vector<1x8x128xf32>
    tpu.vector_store %arg5[%138, %c0_32, %c0_33], %141 {strides = array<i32>} : memref<8x8x128xf32, #tpu.memory_space<vmem>>, vector<1x8x128xf32>,
    %c4_i32 = arith.constant 4 : i32
    %142 = arith.index_cast %c4_i32 : i32 to index
    %c0_34 = arith.constant 0 : index
    %c0_35 = arith.constant 0 : index
    %143 = vector.load %arg2[%142, %c0_34, %c0_35] : memref<8x8x384xf32, #tpu.memory_space<vmem>>, vector<1x8x384xf32>
    %144 = vector.shape_cast %143 : vector<1x8x384xf32> to vector<8x384xf32>
    %cst_36 = arith.constant dense<0.000000e+00> : vector<8x384xf32>
    %145 = tpu.matmul %137, %3, %cst_36 {dimension_numbers = #tpu.dot_dimension_numbers<[1], [0], [0], [1], [0, 0, 1, 1], [], []>} : vector<8x128xf32>, vector<128x384xf32>, vector<8x384xf32> -> vector<8x384xf32>
    %146 = vector.broadcast %4 : vector<1x384xf32> to vector<8x384xf32>
    %147 = arith.addf %145, %146 : vector<8x384xf32>
    %148 = vector.extract_strided_slice %144 {offsets = [0, 0], sizes = [8, 128], strides = [1, 1]} : vector<8x384xf32> to vector<8x128xf32>
    %149 = vector.extract_strided_slice %147 {offsets = [0, 0], sizes = [8, 128], strides = [1, 1]} : vector<8x384xf32> to vector<8x128xf32>
    %150 = arith.addf %148, %149 : vector<8x128xf32>
    %151 = arith.negf %150 : vector<8x128xf32>
    %152 = math.exp %151 : vector<8x128xf32>
    %cst_37 = arith.constant 1.000000e+00 : f32
    %153 = vector.broadcast %cst_37 : f32 to vector<8x128xf32>
    %154 = arith.addf %153, %152 : vector<8x128xf32>
    %155 = arith.divf %153, %154 : vector<8x128xf32>
    %156 = vector.extract_strided_slice %144 {offsets = [0, 128], sizes = [8, 128], strides = [1, 1]} : vector<8x384xf32> to vector<8x128xf32>
    %157 = vector.extract_strided_slice %147 {offsets = [0, 128], sizes = [8, 128], strides = [1, 1]} : vector<8x384xf32> to vector<8x128xf32>
    %158 = arith.addf %156, %157 : vector<8x128xf32>
    %159 = arith.negf %158 : vector<8x128xf32>
    %160 = math.exp %159 : vector<8x128xf32>
    %cst_38 = arith.constant 1.000000e+00 : f32
    %161 = vector.broadcast %cst_38 : f32 to vector<8x128xf32>
    %162 = arith.addf %161, %160 : vector<8x128xf32>
    %163 = arith.divf %161, %162 : vector<8x128xf32>
    %164 = vector.extract_strided_slice %144 {offsets = [0, 256], sizes = [8, 128], strides = [1, 1]} : vector<8x384xf32> to vector<8x128xf32>
    %165 = vector.extract_strided_slice %147 {offsets = [0, 256], sizes = [8, 128], strides = [1, 1]} : vector<8x384xf32> to vector<8x128xf32>
    %166 = arith.mulf %155, %165 : vector<8x128xf32>
    %167 = arith.addf %164, %166 : vector<8x128xf32>
    %168 = math.tanh %167 : vector<8x128xf32>
    %169 = arith.subf %137, %168 : vector<8x128xf32>
    %170 = arith.mulf %163, %169 : vector<8x128xf32>
    %171 = arith.addf %168, %170 : vector<8x128xf32>
    %172 = arith.index_cast %c4_i32 : i32 to index
    %c0_39 = arith.constant 0 : index
    %c0_40 = arith.constant 0 : index
    %173 = vector.load %arg5[%172, %c0_39, %c0_40] : memref<8x8x128xf32, #tpu.memory_space<vmem>>, vector<1x8x128xf32>
    %174 = vector.shape_cast %173 : vector<1x8x128xf32> to vector<8x128xf32>
    %175 = vector.shape_cast %171 : vector<8x128xf32> to vector<1x8x128xf32>
    tpu.vector_store %arg5[%172, %c0_39, %c0_40], %175 {strides = array<i32>} : memref<8x8x128xf32, #tpu.memory_space<vmem>>, vector<1x8x128xf32>,
    %c5_i32 = arith.constant 5 : i32
    %176 = arith.index_cast %c5_i32 : i32 to index
    %c0_41 = arith.constant 0 : index
    %c0_42 = arith.constant 0 : index
    %177 = vector.load %arg2[%176, %c0_41, %c0_42] : memref<8x8x384xf32, #tpu.memory_space<vmem>>, vector<1x8x384xf32>
    %178 = vector.shape_cast %177 : vector<1x8x384xf32> to vector<8x384xf32>
    %cst_43 = arith.constant dense<0.000000e+00> : vector<8x384xf32>
    %179 = tpu.matmul %171, %3, %cst_43 {dimension_numbers = #tpu.dot_dimension_numbers<[1], [0], [0], [1], [0, 0, 1, 1], [], []>} : vector<8x128xf32>, vector<128x384xf32>, vector<8x384xf32> -> vector<8x384xf32>
    %180 = vector.broadcast %4 : vector<1x384xf32> to vector<8x384xf32>
    %181 = arith.addf %179, %180 : vector<8x384xf32>
    %182 = vector.extract_strided_slice %178 {offsets = [0, 0], sizes = [8, 128], strides = [1, 1]} : vector<8x384xf32> to vector<8x128xf32>
    %183 = vector.extract_strided_slice %181 {offsets = [0, 0], sizes = [8, 128], strides = [1, 1]} : vector<8x384xf32> to vector<8x128xf32>
    %184 = arith.addf %182, %183 : vector<8x128xf32>
    %185 = arith.negf %184 : vector<8x128xf32>
    %186 = math.exp %185 : vector<8x128xf32>
    %cst_44 = arith.constant 1.000000e+00 : f32
    %187 = vector.broadcast %cst_44 : f32 to vector<8x128xf32>
    %188 = arith.addf %187, %186 : vector<8x128xf32>
    %189 = arith.divf %187, %188 : vector<8x128xf32>
    %190 = vector.extract_strided_slice %178 {offsets = [0, 128], sizes = [8, 128], strides = [1, 1]} : vector<8x384xf32> to vector<8x128xf32>
    %191 = vector.extract_strided_slice %181 {offsets = [0, 128], sizes = [8, 128], strides = [1, 1]} : vector<8x384xf32> to vector<8x128xf32>
    %192 = arith.addf %190, %191 : vector<8x128xf32>
    %193 = arith.negf %192 : vector<8x128xf32>
    %194 = math.exp %193 : vector<8x128xf32>
    %cst_45 = arith.constant 1.000000e+00 : f32
    %195 = vector.broadcast %cst_45 : f32 to vector<8x128xf32>
    %196 = arith.addf %195, %194 : vector<8x128xf32>
    %197 = arith.divf %195, %196 : vector<8x128xf32>
    %198 = vector.extract_strided_slice %178 {offsets = [0, 256], sizes = [8, 128], strides = [1, 1]} : vector<8x384xf32> to vector<8x128xf32>
    %199 = vector.extract_strided_slice %181 {offsets = [0, 256], sizes = [8, 128], strides = [1, 1]} : vector<8x384xf32> to vector<8x128xf32>
    %200 = arith.mulf %189, %199 : vector<8x128xf32>
    %201 = arith.addf %198, %200 : vector<8x128xf32>
    %202 = math.tanh %201 : vector<8x128xf32>
    %203 = arith.subf %171, %202 : vector<8x128xf32>
    %204 = arith.mulf %197, %203 : vector<8x128xf32>
    %205 = arith.addf %202, %204 : vector<8x128xf32>
    %206 = arith.index_cast %c5_i32 : i32 to index
    %c0_46 = arith.constant 0 : index
    %c0_47 = arith.constant 0 : index
    %207 = vector.load %arg5[%206, %c0_46, %c0_47] : memref<8x8x128xf32, #tpu.memory_space<vmem>>, vector<1x8x128xf32>
    %208 = vector.shape_cast %207 : vector<1x8x128xf32> to vector<8x128xf32>
    %209 = vector.shape_cast %205 : vector<8x128xf32> to vector<1x8x128xf32>
    tpu.vector_store %arg5[%206, %c0_46, %c0_47], %209 {strides = array<i32>} : memref<8x8x128xf32, #tpu.memory_space<vmem>>, vector<1x8x128xf32>,
    %c6_i32 = arith.constant 6 : i32
    %210 = arith.index_cast %c6_i32 : i32 to index
    %c0_48 = arith.constant 0 : index
    %c0_49 = arith.constant 0 : index
    %211 = vector.load %arg2[%210, %c0_48, %c0_49] : memref<8x8x384xf32, #tpu.memory_space<vmem>>, vector<1x8x384xf32>
    %212 = vector.shape_cast %211 : vector<1x8x384xf32> to vector<8x384xf32>
    %cst_50 = arith.constant dense<0.000000e+00> : vector<8x384xf32>
    %213 = tpu.matmul %205, %3, %cst_50 {dimension_numbers = #tpu.dot_dimension_numbers<[1], [0], [0], [1], [0, 0, 1, 1], [], []>} : vector<8x128xf32>, vector<128x384xf32>, vector<8x384xf32> -> vector<8x384xf32>
    %214 = vector.broadcast %4 : vector<1x384xf32> to vector<8x384xf32>
    %215 = arith.addf %213, %214 : vector<8x384xf32>
    %216 = vector.extract_strided_slice %212 {offsets = [0, 0], sizes = [8, 128], strides = [1, 1]} : vector<8x384xf32> to vector<8x128xf32>
    %217 = vector.extract_strided_slice %215 {offsets = [0, 0], sizes = [8, 128], strides = [1, 1]} : vector<8x384xf32> to vector<8x128xf32>
    %218 = arith.addf %216, %217 : vector<8x128xf32>
    %219 = arith.negf %218 : vector<8x128xf32>
    %220 = math.exp %219 : vector<8x128xf32>
    %cst_51 = arith.constant 1.000000e+00 : f32
    %221 = vector.broadcast %cst_51 : f32 to vector<8x128xf32>
    %222 = arith.addf %221, %220 : vector<8x128xf32>
    %223 = arith.divf %221, %222 : vector<8x128xf32>
    %224 = vector.extract_strided_slice %212 {offsets = [0, 128], sizes = [8, 128], strides = [1, 1]} : vector<8x384xf32> to vector<8x128xf32>
    %225 = vector.extract_strided_slice %215 {offsets = [0, 128], sizes = [8, 128], strides = [1, 1]} : vector<8x384xf32> to vector<8x128xf32>
    %226 = arith.addf %224, %225 : vector<8x128xf32>
    %227 = arith.negf %226 : vector<8x128xf32>
    %228 = math.exp %227 : vector<8x128xf32>
    %cst_52 = arith.constant 1.000000e+00 : f32
    %229 = vector.broadcast %cst_52 : f32 to vector<8x128xf32>
    %230 = arith.addf %229, %228 : vector<8x128xf32>
    %231 = arith.divf %229, %230 : vector<8x128xf32>
    %232 = vector.extract_strided_slice %212 {offsets = [0, 256], sizes = [8, 128], strides = [1, 1]} : vector<8x384xf32> to vector<8x128xf32>
    %233 = vector.extract_strided_slice %215 {offsets = [0, 256], sizes = [8, 128], strides = [1, 1]} : vector<8x384xf32> to vector<8x128xf32>
    %234 = arith.mulf %223, %233 : vector<8x128xf32>
    %235 = arith.addf %232, %234 : vector<8x128xf32>
    %236 = math.tanh %235 : vector<8x128xf32>
    %237 = arith.subf %205, %236 : vector<8x128xf32>
    %238 = arith.mulf %231, %237 : vector<8x128xf32>
    %239 = arith.addf %236, %238 : vector<8x128xf32>
    %240 = arith.index_cast %c6_i32 : i32 to index
    %c0_53 = arith.constant 0 : index
    %c0_54 = arith.constant 0 : index
    %241 = vector.load %arg5[%240, %c0_53, %c0_54] : memref<8x8x128xf32, #tpu.memory_space<vmem>>, vector<1x8x128xf32>
    %242 = vector.shape_cast %241 : vector<1x8x128xf32> to vector<8x128xf32>
    %243 = vector.shape_cast %239 : vector<8x128xf32> to vector<1x8x128xf32>
    tpu.vector_store %arg5[%240, %c0_53, %c0_54], %243 {strides = array<i32>} : memref<8x8x128xf32, #tpu.memory_space<vmem>>, vector<1x8x128xf32>,
    %c7_i32 = arith.constant 7 : i32
    %244 = arith.index_cast %c7_i32 : i32 to index
    %c0_55 = arith.constant 0 : index
    %c0_56 = arith.constant 0 : index
    %245 = vector.load %arg2[%244, %c0_55, %c0_56] : memref<8x8x384xf32, #tpu.memory_space<vmem>>, vector<1x8x384xf32>
    %246 = vector.shape_cast %245 : vector<1x8x384xf32> to vector<8x384xf32>
    %cst_57 = arith.constant dense<0.000000e+00> : vector<8x384xf32>
    %247 = tpu.matmul %239, %3, %cst_57 {dimension_numbers = #tpu.dot_dimension_numbers<[1], [0], [0], [1], [0, 0, 1, 1], [], []>} : vector<8x128xf32>, vector<128x384xf32>, vector<8x384xf32> -> vector<8x384xf32>
    %248 = vector.broadcast %4 : vector<1x384xf32> to vector<8x384xf32>
    %249 = arith.addf %247, %248 : vector<8x384xf32>
    %250 = vector.extract_strided_slice %246 {offsets = [0, 0], sizes = [8, 128], strides = [1, 1]} : vector<8x384xf32> to vector<8x128xf32>
    %251 = vector.extract_strided_slice %249 {offsets = [0, 0], sizes = [8, 128], strides = [1, 1]} : vector<8x384xf32> to vector<8x128xf32>
    %252 = arith.addf %250, %251 : vector<8x128xf32>
    %253 = arith.negf %252 : vector<8x128xf32>
    %254 = math.exp %253 : vector<8x128xf32>
    %cst_58 = arith.constant 1.000000e+00 : f32
    %255 = vector.broadcast %cst_58 : f32 to vector<8x128xf32>
    %256 = arith.addf %255, %254 : vector<8x128xf32>
    %257 = arith.divf %255, %256 : vector<8x128xf32>
    %258 = vector.extract_strided_slice %246 {offsets = [0, 128], sizes = [8, 128], strides = [1, 1]} : vector<8x384xf32> to vector<8x128xf32>
    %259 = vector.extract_strided_slice %249 {offsets = [0, 128], sizes = [8, 128], strides = [1, 1]} : vector<8x384xf32> to vector<8x128xf32>
    %260 = arith.addf %258, %259 : vector<8x128xf32>
    %261 = arith.negf %260 : vector<8x128xf32>
    %262 = math.exp %261 : vector<8x128xf32>
    %cst_59 = arith.constant 1.000000e+00 : f32
    %263 = vector.broadcast %cst_59 : f32 to vector<8x128xf32>
    %264 = arith.addf %263, %262 : vector<8x128xf32>
    %265 = arith.divf %263, %264 : vector<8x128xf32>
    %266 = vector.extract_strided_slice %246 {offsets = [0, 256], sizes = [8, 128], strides = [1, 1]} : vector<8x384xf32> to vector<8x128xf32>
    %267 = vector.extract_strided_slice %249 {offsets = [0, 256], sizes = [8, 128], strides = [1, 1]} : vector<8x384xf32> to vector<8x128xf32>
    %268 = arith.mulf %257, %267 : vector<8x128xf32>
    %269 = arith.addf %266, %268 : vector<8x128xf32>
    %270 = math.tanh %269 : vector<8x128xf32>
    %271 = arith.subf %239, %270 : vector<8x128xf32>
    %272 = arith.mulf %265, %271 : vector<8x128xf32>
    %273 = arith.addf %270, %272 : vector<8x128xf32>
    %274 = arith.index_cast %c7_i32 : i32 to index
    %c0_60 = arith.constant 0 : index
    %c0_61 = arith.constant 0 : index
    %275 = vector.load %arg5[%274, %c0_60, %c0_61] : memref<8x8x128xf32, #tpu.memory_space<vmem>>, vector<1x8x128xf32>
    %276 = vector.shape_cast %275 : vector<1x8x128xf32> to vector<8x128xf32>
    %277 = vector.shape_cast %273 : vector<8x128xf32> to vector<1x8x128xf32>
    tpu.vector_store %arg5[%274, %c0_60, %c0_61], %277 {strides = array<i32>} : memref<8x8x128xf32, #tpu.memory_space<vmem>>, vector<1x8x128xf32>,
    %c8_i32 = arith.constant 8 : i32
    %c0_62 = arith.constant 0 : index
    %c0_63 = arith.constant 0 : index
    %278 = vector.load %arg6[%c0_62, %c0_63] : memref<8x128xf32, #tpu.memory_space<vmem>>, vector<8x128xf32>
    tpu.vector_store %arg6[%c0_62, %c0_63], %273 {strides = array<i32>} : memref<8x128xf32, #tpu.memory_space<vmem>>, vector<8x128xf32>,
    return
  }
  func.func @transform_0(%arg0: i32, %arg1: i32) -> (i32, i32, i32) {
    %c0_i32 = arith.constant 0 : i32
    %c0_i32_0 = arith.constant 0 : i32
    return %arg1, %arg0, %c0_i32 : i32, i32, i32
  }
  func.func @transform_1(%arg0: i32, %arg1: i32) -> (i32, i32) {
    %c0_i32 = arith.constant 0 : i32
    %c0_i32_0 = arith.constant 0 : i32
    %c0_i32_1 = arith.constant 0 : i32
    return %c0_i32, %c0_i32_0 : i32, i32
  }
  func.func @transform_2(%arg0: i32, %arg1: i32) -> (i32, i32) {
    %c0_i32 = arith.constant 0 : i32
    %c0_i32_0 = arith.constant 0 : i32
    %c0_i32_1 = arith.constant 0 : i32
    return %c0_i32, %c0_i32_0 : i32, i32
  }
  func.func @transform_3(%arg0: i32, %arg1: i32) -> (i32, i32, i32) {
    %c0_i32 = arith.constant 0 : i32
    %c0_i32_0 = arith.constant 0 : i32
    return %arg1, %arg0, %c0_i32 : i32, i32, i32
  }
}

</mosaic_0001>

<bundles_post_ra>
// kernel: gru_encoder_forward.1
= control target key start
LH: loop header
LB: loop body
LE: loop exit
PB: predicated region body
PF: predicated region fallthrough
CT: control target
= control target key end

     0   :  { %v1148_v44 = vmov 0.0   ;;  %s2116_s1 = inlined_call_operand.vmem [shape: f32[128,384], index: 1, kind: input, shape index: {}]   ;;  %s2117_s2 = inlined_call_operand.vmem [shape: f32[1,384], index: 2, kind: input, shape index: {}]   ;;  %s2118_s0 = inlined_call_operand.vmem [shape: f32[8,8,384], index: 0, kind: input, shape index: {}]   ;;  %s2119_s3 = inlined_call_operand.vmem [shape: f32[8,8,128], index: 3, kind: output, shape index: {}]  }
   0x1   :  { %v1172_v0 = vld [vmem:[%s2116_s1 + $0x168] sm:$0xff]  ;;  %v1177_v1 = vld [vmem:[%s2116_s1 + $0x170] sm:$0xff]  ;;  %v1189_v3 = vld [vmem:[%s2116_s1 + $0x158] sm:$0xff] }
   0x2   :  { %v1182_v2 = vld [vmem:[%s2116_s1 + $0x150] sm:$0xff]  ;;  %79 = vmatpush.msra.mxu0 %v1172_v0  ;;  %99 = vmatpush.msra.mxu1 %v1177_v1  ;;  %v1194_v4 = vld [vmem:[%s2116_s1 + $0x138] sm:$0xff]  ;;  %v1199_v5 = vld [vmem:[%s2116_s1 + $0x140] sm:$0xff] }
   0x3   :  { %190 = vmatpush.msra.mxu3 %v1172_v0  ;;  %v1207_v6 = vld [vmem:[%s2116_s1 + $0x120] sm:$0xff]  ;;  %v1212_v7 = vld [vmem:[%s2116_s1 + $0x128] sm:$0xff]  ;;  %v1225_v9 = vld [vmem:[%s2116_s1 + $0x110] sm:$0xff] }
   0x4   :  { %80 = vmatpush.msra.mxu0 %v1182_v2  ;;  %100 = vmatpush.msra.mxu1 %v1189_v3  ;;  %v1220_v8 = vld [vmem:[%s2116_s1 + $0x108] sm:$0xff]  ;;  %v1233_v10 = vld [vmem:[%s2116_s1 + $0xf0] sm:$0xff]  ;;  %v1238_v11 = vld [vmem:[%s2116_s1 + $0xf8] sm:$0xff] }
   0x5   :  { %191 = vmatpush.msra.mxu3 %v1182_v2  ;;  %v1243_v12 = vld [vmem:[%s2116_s1 + $0x178] sm:$0xff]  ;;  %v1251_v13 = vld [vmem:[%s2116_s1 + $0x160] sm:$0xff]  ;;  %v1270_v16 = vld [vmem:[%s2116_s1 + $0x148] sm:$0xff] }
   0x6   :  { %81 = vmatpush.msra.mxu0 %v1194_v4  ;;  %101 = vmatpush.msra.mxu1 %v1199_v5  ;;  %v1256_v14 = vld [vmem:[%s2116_s1 + $0xd8] sm:$0xff]  ;;  %v1261_v15 = vld [vmem:[%s2116_s1 + $0xe0] sm:$0xff]  ;;  %v1280_v18 = vld [vmem:[%s2116_s1 + $0xc8] sm:$0xff] }
   0x7   :  { %192 = vmatpush.msra.mxu3 %v1194_v4  ;;  %119 = vmatpush.msra.mxu2 %v1243_v12  ;;  %v1275_v17 = vld [vmem:[%s2116_s1 + $0xc0] sm:$0xff]  ;;  %v1289_v19 = vld [vmem:[%s2116_s1 + $0x130] sm:$0xff]  ;;  %v1294_v20 = vld [vmem:[%s2116_s1 + $0xa8] sm:$0xff] }
   0x8   :  { %82 = vmatpush.msra.mxu0 %v1207_v6  ;;  %102 = vmatpush.msra.mxu1 %v1212_v7  ;;  %v1299_v21 = vld [vmem:[%s2116_s1 + $0xb0] sm:$0xff]  ;;  %v1308_v22 = vld [vmem:[%s2116_s1 + $0x118] sm:$0xff]  ;;  %v1327_v25 = vld [vmem:[%s2116_s1 + $0x100] sm:$0xff] }
   0x9   :  { %193 = vmatpush.msra.mxu3 %v1207_v6  ;;  %120 = vmatpush.msra.mxu2 %v1251_v13  ;;  %v1313_v23 = vld [vmem:[%s2116_s1 + $0x90] sm:$0xff]  ;;  %v1318_v24 = vld [vmem:[%s2116_s1 + $0x98] sm:$0xff]  ;;  %v1337_v27 = vld [vmem:[%s2116_s1 + $0x80] sm:$0xff] }
   0xa   :  { %83 = vmatpush.msra.mxu0 %v1220_v8  ;;  %103 = vmatpush.msra.mxu1 %v1225_v9  ;;  %v1332_v26 = vld [vmem:[%s2116_s1 + $0x78] sm:$0xff]  ;;  %v1346_v28 = vld [vmem:[%s2116_s1 + $0xe8] sm:$0xff]  ;;  %v1351_v29 = vld [vmem:[%s2116_s1 + $0x60] sm:$0xff] }
   0xb   :  { %194 = vmatpush.msra.mxu3 %v1220_v8  ;;  %121 = vmatpush.msra.mxu2 %v1270_v16  ;;  %v1356_v30 = vld [vmem:[%s2116_s1 + $0x68] sm:$0xff]  ;;  %v1365_v31 = vld [vmem:[%s2116_s1 + $0xd0] sm:$0xff]  ;;  %v1384_v34 = vld [vmem:[%s2116_s1 + $0xb8] sm:$0xff] }
   0xc   :  { %84 = vmatpush.msra.mxu0 %v1233_v10  ;;  %104 = vmatpush.msra.mxu1 %v1238_v11  ;;  %v1370_v32 = vld [vmem:[%s2116_s1 + $0x48] sm:$0xff]  ;;  %v1375_v33 = vld [vmem:[%s2116_s1 + $0x50] sm:$0xff]  ;;  %v1394_v36 = vld [vmem:[%s2116_s1 + $0x38] sm:$0xff] }
   0xd   :  { %195 = vmatpush.msra.mxu3 %v1233_v10  ;;  %122 = vmatpush.msra.mxu2 %v1289_v19  ;;  %v1389_v35 = vld [vmem:[%s2116_s1 + $0x30] sm:$0xff]  ;;  %v1403_v37 = vld [vmem:[%s2116_s1 + $0xa0] sm:$0xff]  ;;  %v1408_v38 = vld [vmem:[%s2116_s1 + $0x18] sm:$0xff] }
   0xe   :  { %85 = vmatpush.msra.mxu0 %v1256_v14  ;;  %105 = vmatpush.msra.mxu1 %v1261_v15  ;;  %2138 = vst [vmem:[#allocation3_spill] sm:$0xff] %v1408_v38  ;;  %v1413_v39 = vld [vmem:[%s2116_s1 + $0x20] sm:$0xff]  ;;  %v1422_v40 = vld [vmem:[%s2116_s1 + $0x88] sm:$0xff]  ;;  %v1442_v43 = vld [vmem:[%s2116_s1 + $0x70] sm:$0xff] }
   0xf   :  { %196 = vmatpush.msra.mxu3 %v1256_v14  ;;  %123 = vmatpush.msra.mxu2 %v1308_v22  ;;  %2139 = vst [vmem:[#allocation4_spill] sm:$0xff] %v1413_v39  ;;  %v1427_v41 = vld [vmem:[%s2116_s1] sm:$0xff]  ;;  %v1432_v42 = vld [vmem:[%s2116_s1 + $0x8] sm:$0xff]  ;;  %v1450_v45 = vld [vmem:[%s2116_s1 + $0x58] sm:$0xff] }
  0x10   :  { %86 = vmatpush.msra.mxu0 %v1275_v17  ;;  %106 = vmatpush.msra.mxu1 %v1280_v18  ;;  %2140 = vst [vmem:[#allocation5_spill] sm:$0xff] %v1427_v41  ;;  %v1457_v46 = vld [vmem:[%s2116_s1 + $0x40] sm:$0xff]  ;;  %v1466_v47 = vld [vmem:[%s2116_s1 + $0x28] sm:$0xff]  ;;  %v1475_v48 = vld [vmem:[%s2116_s1 + $0x10] sm:$0xff] }
  0x11   :  { %197 = vmatpush.msra.mxu3 %v1275_v17  ;;  %124 = vmatpush.msra.mxu2 %v1327_v25  ;;  %2141 = vst [vmem:[#allocation6_spill] sm:$0xff] %v1432_v42  ;;  %v67_v49 = vld [vmem:[%s2117_s2] sm:$0x7]  ;;  %v70_v54 = vld [vmem:[%s2118_s0 + $0x8] sm:$0xff] }
  0x12   :  { %87 = vmatpush.msra.mxu0 %v1294_v20  ;;  %107 = vmatpush.msra.mxu1 %v1299_v21  ;;  %2142 = vst [vmem:[#allocation7_spill] sm:$0xff] %v1466_v47  ;;  %v1588_v50 = vperm.slane %v67_v49, 0  ;;  %v1590_v51 = vperm.slane %v67_v49, 1  ;;  %v69_v52 = vld [vmem:[%s2118_s0] sm:$0xff] }
  0x13   :  { %198 = vmatpush.msra.mxu3 %v1294_v20  ;;  %125 = vmatpush.msra.mxu2 %v1346_v28  ;;  %2143 = vst [vmem:[#allocation8_spill] sm:$0xff] %v1475_v48 }
  0x14   :  { %88 = vmatpush.msra.mxu0 %v1313_v23  ;;  %108 = vmatpush.msra.mxu1 %v1318_v24  ;;  %2144 = vst [vmem:[#allocation9_spill] sm:$0xff] %v1588_v50 }
  0x15   :  { %199 = vmatpush.msra.mxu3 %v1313_v23  ;;  %126 = vmatpush.msra.mxu2 %v1365_v31  ;;  %2145 = vst [vmem:[#allocation10_spill] sm:$0xff] %v1590_v51 }
  0x16   :  { %89 = vmatpush.msra.mxu0 %v1332_v26  ;;  %109 = vmatpush.msra.mxu1 %v1337_v27 }
  0x17   :  { %200 = vmatpush.msra.mxu3 %v1332_v26  ;;  %127 = vmatpush.msra.mxu2 %v1384_v34 }
  0x18   :  { %90 = vmatpush.msra.mxu0 %v1351_v29  ;;  %110 = vmatpush.msra.mxu1 %v1356_v30 }
  0x19   :  { %201 = vmatpush.msra.mxu3 %v1351_v29  ;;  %128 = vmatpush.msra.mxu2 %v1403_v37 }
  0x1a   :  { %91 = vmatpush.msra.mxu0 %v1370_v32  ;;  %111 = vmatpush.msra.mxu1 %v1375_v33 }
  0x1b   :  { %202 = vmatpush.msra.mxu3 %v1370_v32  ;;  %129 = vmatpush.msra.mxu2 %v1422_v40 }
  0x1c   :  { %92 = vmatpush.msra.mxu0 %v1389_v35  ;;  %112 = vmatpush.msra.mxu1 %v1394_v36 }
  0x1d   :  { %203 = vmatpush.msra.mxu3 %v1389_v35  ;;  %130 = vmatpush.msra.mxu2 %v1442_v43 }
  0x1e   :  { %93 = vmatpush.msra.mxu0 %v1408_v38  ;;  %113 = vmatpush.msra.mxu1 %v1413_v39 }
  0x1f   :  { %204 = vmatpush.msra.mxu3 %v1408_v38  ;;  %131 = vmatpush.msra.mxu2 %v1450_v45 }
  0x20   :  { %94 = vmatpush.msra.mxu0 %v1427_v41  ;;  %114 = vmatpush.msra.mxu1 %v1432_v42 }
  0x21   :  { %95 = vmatmul.f32.vlgmr.msra.gmra.mxu0 %v1148_v44  ;;  %115 = vmatmul.f32.vlgmr.msra.gmra.mxu1 %v1148_v44 }
  0x22   :  { %210 = vmatpush.msrb.mxu0 %v1177_v1  ;;  %230 = vmatpush.msrb.mxu1 %v1243_v12 }
  0x23   :  { %205 = vmatpush.msra.mxu3 %v1427_v41  ;;  %132 = vmatpush.msra.mxu2 %v1457_v46 }
  0x24   :  { %211 = vmatpush.msrb.mxu0 %v1189_v3  ;;  %231 = vmatpush.msrb.mxu1 %v1251_v13 }
  0x25   :  { %322 = vmatpush.msrb.mxu3 %v1177_v1  ;;  %133 = vmatpush.msra.mxu2 %v1466_v47 }
  0x26   :  { %212 = vmatpush.msrb.mxu0 %v1199_v5  ;;  %232 = vmatpush.msrb.mxu1 %v1270_v16 }
  0x27   :  { %323 = vmatpush.msrb.mxu3 %v1189_v3  ;;  %134 = vmatpush.msra.mxu2 %v1475_v48 }
  0x28   :  { %213 = vmatpush.msrb.mxu0 %v1212_v7  ;;  %233 = vmatpush.msrb.mxu1 %v1289_v19 }
  0x29   :  { %324 = vmatpush.msrb.mxu3 %v1199_v5  ;;  %135 = vmatmul.f32.vlgmr.msra.gmra.mxu2 %v1148_v44 }
  0x2a   :  { %214 = vmatpush.msrb.mxu0 %v1225_v9  ;;  %234 = vmatpush.msrb.mxu1 %v1308_v22 }
  0x2b   :  { %302 = vmatpush.msrb.mxu2 %v1172_v0  ;;  %325 = vmatpush.msrb.mxu3 %v1212_v7 }
  0x2c   :  { %215 = vmatpush.msrb.mxu0 %v1238_v11  ;;  %235 = vmatpush.msrb.mxu1 %v1327_v25 }
  0x2d   :  { %303 = vmatpush.msrb.mxu2 %v1182_v2  ;;  %326 = vmatpush.msrb.mxu3 %v1225_v9 }
  0x2e   :  { %216 = vmatpush.msrb.mxu0 %v1261_v15  ;;  %236 = vmatpush.msrb.mxu1 %v1346_v28 }
  0x2f   :  { %304 = vmatpush.msrb.mxu2 %v1194_v4  ;;  %327 = vmatpush.msrb.mxu3 %v1238_v11 }
  0x30   :  { %217 = vmatpush.msrb.mxu0 %v1280_v18  ;;  %237 = vmatpush.msrb.mxu1 %v1365_v31 }
  0x31   :  { %305 = vmatpush.msrb.mxu2 %v1207_v6  ;;  %328 = vmatpush.msrb.mxu3 %v1261_v15 }
  0x32   :  { %218 = vmatpush.msrb.mxu0 %v1299_v21  ;;  %238 = vmatpush.msrb.mxu1 %v1384_v34 }
  0x33   :  { %306 = vmatpush.msrb.mxu2 %v1220_v8  ;;  %329 = vmatpush.msrb.mxu3 %v1280_v18 }
  0x34   :  { %219 = vmatpush.msrb.mxu0 %v1318_v24  ;;  %239 = vmatpush.msrb.mxu1 %v1403_v37 }
  0x35   :  { %307 = vmatpush.msrb.mxu2 %v1233_v10  ;;  %330 = vmatpush.msrb.mxu3 %v1299_v21 }
  0x36   :  { %220 = vmatpush.msrb.mxu0 %v1337_v27  ;;  %240 = vmatpush.msrb.mxu1 %v1422_v40 }
  0x37   :  { %308 = vmatpush.msrb.mxu2 %v1256_v14  ;;  %331 = vmatpush.msrb.mxu3 %v1318_v24 }
  0x38   :  { %221 = vmatpush.msrb.mxu0 %v1356_v30  ;;  %241 = vmatpush.msrb.mxu1 %v1442_v43 }
  0x39   :  { %309 = vmatpush.msrb.mxu2 %v1275_v17  ;;  %332 = vmatpush.msrb.mxu3 %v1337_v27 }
  0x3a   :  { %222 = vmatpush.msrb.mxu0 %v1375_v33  ;;  %242 = vmatpush.msrb.mxu1 %v1450_v45 }
  0x3b   :  { %310 = vmatpush.msrb.mxu2 %v1294_v20  ;;  %333 = vmatpush.msrb.mxu3 %v1356_v30 }
  0x3c   :  { %223 = vmatpush.msrb.mxu0 %v1394_v36  ;;  %243 = vmatpush.msrb.mxu1 %v1457_v46 }
  0x3d   :  { %311 = vmatpush.msrb.mxu2 %v1313_v23  ;;  %334 = vmatpush.msrb.mxu3 %v1375_v33 }
  0x3e   :  { %224 = vmatpush.msrb.mxu0 %v1413_v39  ;;  %244 = vmatpush.msrb.mxu1 %v1466_v47 }
  0x3f   :  { %312 = vmatpush.msrb.mxu2 %v1332_v26  ;;  %335 = vmatpush.msrb.mxu3 %v1394_v36 }
  0x40   :  { %225 = vmatpush.msrb.mxu0 %v1432_v42  ;;  %245 = vmatpush.msrb.mxu1 %v1475_v48 }
  0x41   :  { %313 = vmatpush.msrb.mxu2 %v1351_v29  ;;  %336 = vmatpush.msrb.mxu3 %v1413_v39 }
  0x42   :  { %342 = vmatpush.msra.mxu0 %v1243_v12  ;;  %414 = vmatpush.msra.mxu1 %v1172_v0 }
  0x43   :  { %314 = vmatpush.msrb.mxu2 %v1370_v32  ;;  %337 = vmatpush.msrb.mxu3 %v1432_v42 }
  0x44   :  { %343 = vmatpush.msra.mxu0 %v1251_v13  ;;  %415 = vmatpush.msra.mxu1 %v1182_v2 }
  0x45   :  { %315 = vmatpush.msrb.mxu2 %v1389_v35 }
  0x46   :  { %344 = vmatpush.msra.mxu0 %v1270_v16  ;;  %416 = vmatpush.msra.mxu1 %v1194_v4 }
  0x47   :  { %316 = vmatpush.msrb.mxu2 %v1408_v38 }
  0x48   :  { %345 = vmatpush.msra.mxu0 %v1289_v19  ;;  %417 = vmatpush.msra.mxu1 %v1207_v6 }
  0x49   :  { %317 = vmatpush.msrb.mxu2 %v1427_v41 }
  0x4a   :  { %346 = vmatpush.msra.mxu0 %v1308_v22  ;;  %418 = vmatpush.msra.mxu1 %v1220_v8 }
  0x4b   :  { %434 = vmatpush.msra.mxu2 %v1177_v1 }
  0x4c   :  { %347 = vmatpush.msra.mxu0 %v1327_v25  ;;  %419 = vmatpush.msra.mxu1 %v1233_v10 }
  0x4d   :  { %435 = vmatpush.msra.mxu2 %v1189_v3 }
  0x4e   :  { %348 = vmatpush.msra.mxu0 %v1346_v28  ;;  %420 = vmatpush.msra.mxu1 %v1256_v14 }
  0x4f   :  { %436 = vmatpush.msra.mxu2 %v1199_v5 }
  0x50   :  { %349 = vmatpush.msra.mxu0 %v1365_v31  ;;  %421 = vmatpush.msra.mxu1 %v1275_v17 }
  0x51   :  { %437 = vmatpush.msra.mxu2 %v1212_v7 }
  0x52   :  { %350 = vmatpush.msra.mxu0 %v1384_v34  ;;  %422 = vmatpush.msra.mxu1 %v1294_v20 }
  0x53   :  { %438 = vmatpush.msra.mxu2 %v1225_v9 }
  0x54   :  { %351 = vmatpush.msra.mxu0 %v1403_v37  ;;  %423 = vmatpush.msra.mxu1 %v1313_v23 }
  0x55   :  { %439 = vmatpush.msra.mxu2 %v1238_v11 }
  0x56   :  { %352 = vmatpush.msra.mxu0 %v1422_v40  ;;  %424 = vmatpush.msra.mxu1 %v1332_v26 }
  0x57   :  { %440 = vmatpush.msra.mxu2 %v1261_v15 }
  0x58   :  { %353 = vmatpush.msra.mxu0 %v1442_v43  ;;  %425 = vmatpush.msra.mxu1 %v1351_v29 }
  0x59   :  { %441 = vmatpush.msra.mxu2 %v1280_v18 }
  0x5a   :  { %354 = vmatpush.msra.mxu0 %v1450_v45  ;;  %426 = vmatpush.msra.mxu1 %v1370_v32 }
  0x5b   :  { %442 = vmatpush.msra.mxu2 %v1299_v21 }
  0x5c   :  { %355 = vmatpush.msra.mxu0 %v1457_v46  ;;  %427 = vmatpush.msra.mxu1 %v1389_v35 }
  0x5d   :  { %443 = vmatpush.msra.mxu2 %v1318_v24 }
  0x5e   :  { %356 = vmatpush.msra.mxu0 %v1466_v47  ;;  %428 = vmatpush.msra.mxu1 %v1408_v38  ;;  %v1600_v38 = vperm.slane %v67_v49, 2  ;;  %v71_v49 = vld [vmem:[%s2118_s0 + $0x10] sm:$0xff] }
  0x5f   :  { %444 = vmatpush.msra.mxu2 %v1337_v27 }
  0x60   :  { %357 = vmatpush.msra.mxu0 %v1475_v48  ;;  %429 = vmatpush.msra.mxu1 %v1427_v41  ;;  %2146 = vst [vmem:[#allocation11_spill] sm:$0xff] %v1600_v38 }
  0x61   :  { %445 = vmatpush.msra.mxu2 %v1356_v30 }
  0x63   :  { %446 = vmatpush.msra.mxu2 %v1375_v33 }
  0x65   :  { %447 = vmatpush.msra.mxu2 %v1394_v36 }
  0x67   :  { %448 = vmatpush.msra.mxu2 %v1413_v39 }
  0x69   :  { %449 = vmatpush.msra.mxu2 %v1432_v42 }
  0x9e   :  { %v96_v53 = vpop.f32.mrf.mxu0  ;;  %v116_v55 = vpop.f32.mrf.mxu1 }
  0x9f   :  { %v97_v56 = vadd.f32 %v96_v53, %v1588_v50  ;;  %v117_v57 = vadd.f32 %v116_v55, %v1590_v51 }
  0xa1   :  { %v139_v58 = vadd.f32 %v97_v56, %v69_v52  ;;  %v159_v59 = vadd.f32 %v117_v57, %v70_v54 }
  0xa3   :  { %v975_v60 = vmul.f32 -1.442695, %v139_v58  ;;  %v976_v61 = vmul.f32 -1.442695, %v159_v59 }
  0xa5   :  { %1020 = vpow2.f32 %v975_v60 }
  0xa6   :  { %1022 = vpow2.f32 %v976_v61 }
  0xab   :  { %v1021_v62 = vpop.eup %1020 }
  0xac   :  { %v1023_v63 = vpop.eup %1022  ;;  %v143_v44 = vadd.f32 1.0, %v1021_v62  ;;  %v136_v55 = vpop.f32.mrf.mxu2 }
  0xad   :  { %v163_v42 = vadd.f32 1.0, %v1023_v63  ;;  %v137_v57 = vadd.f32 %v136_v55, %v1600_v38 }
  0xae   :  { %1024 = vrcp.f32 %v143_v44  ;;  %v155_v52 = vand.u32 2147483648, %v143_v44  ;;  %v153_v56 = vand.u32 2147483647, %v143_v44  ;;  %vm149_vm1 = vweird.f32 %v143_v44 }
  0xaf   :  { %1026 = vrcp.f32 %v163_v42  ;;  %vm169_vm4 = vweird.f32 %v163_v42 }
  0xb0   :  { %v156_v60 = vor.u32 1.1754944e-38, %v155_v52  ;;  %vm154_vm3 = vcmp.eq.f32.partialorder %v153_v56, 8.507059e+37 }
  0xb4   :  { %v1025_v41 = vpop.eup %1024 }
  0xb5   :  { %v1027_v48 = vpop.eup %1026  ;;  %v145_v39 = vmul.f32 %v1025_v41, %v143_v44  ;;  %vm150_vm0 = vweird.f32 %v1025_v41 }
  0xb6   :  { %v165_v50 = vmul.f32 %v1027_v48, %v163_v42  ;;  %vm151_vm2 = vmor %vm149_vm1, %vm150_vm0  ;;  %vm170_vm5 = vweird.f32 %v1027_v48 }
  0xb7   :  { %v146_v53 = vsub.f32 1.0, %v145_v39  ;;  %vm171_vm6 = vmor %vm169_vm4, %vm170_vm5 }
  0xb8   :  { %v166_v59 = vsub.f32 1.0, %v165_v50 }
  0xb9   :  { %v147_v54 = vmul.f32 %v1025_v41, %v146_v53  ;;  %v175_v53 = vand.u32 2147483648, %v163_v42 }
  0xba   :  { %v167_v63 = vmul.f32 %v1027_v48, %v166_v59  ;;  %v2151_v59 = vld [vmem:[#allocation6_spill] sm:$0xff] }
  0xbb   :  { %v148_v58 = vadd.f32 %v1025_v41, %v147_v54  ;;  %v173_v54 = vand.u32 2147483647, %v163_v42  ;;  %v176_v50 = vor.u32 1.1754944e-38, %v175_v53  ;;  %v2147_v42 = vld [vmem:[#allocation3_spill] sm:$0xff]  ;;  %v977_v53 = vld [vmem:[%s2118_s0 + $0x18] sm:$0xff] }
  0xbc   :  { %v168_v55 = vadd.f32 %v1027_v48, %v167_v63 }
  0xbd   :  { %v152_v61 = vsel %vm151_vm2, %v1025_v41, %v148_v58  ;;  %vm174_vm7 = vcmp.eq.f32.partialorder %v173_v54, 8.507059e+37  ;;  %v2153_v54 = vld [vmem:[#allocation9_spill] sm:$0xff] }
  0xbe   :  { %v157_v39 = vsel %vm154_vm3, %v156_v60, %v152_v61  ;;  %v172_v44 = vsel %vm171_vm6, %v1027_v48, %v168_v55  ;;  %v2148_v48 = vld [vmem:[#allocation4_spill] sm:$0xff]  ;;  %v978_v60 = vld [vmem:[%s2118_s0 + $0x20] sm:$0xff] }
  0xbf   :  { %v179_v62 = vmul.f32 %v157_v39, %v137_v57  ;;  %v177_v56 = vsel %vm174_vm7, %v176_v50, %v172_v44  ;;  %v2150_v57 = vld [vmem:[#allocation5_spill] sm:$0xff] }
  0xc1   :  { %v180_v51 = vadd.f32 %v179_v62, %v71_v49  ;;  %v2152_v49 = vld [vmem:[#allocation10_spill] sm:$0xff] }
  0xc3   :  { %1028 = vtanh.f32 %v180_v51  ;;  %v2149_v51 = vld [vmem:[#allocation8_spill] sm:$0xff] }
  0xc9   :  { %v1029_v41 = vpop.eup %1028 }
  0xca   :  { %v182_v52 = vsub.f32 0.0, %v1029_v41 }
  0xcc   :  { %v183_v58 = vmul.f32 %v182_v52, %v177_v56 }
  0xce   :  { %v1606_v38 = vadd.f32 %v1029_v41, %v183_v58 }
  0xd0   :  { %185 = vst [vmem:[%s2119_s3] sm:$0xff] %v1606_v38  ;;  %206 = vmatmul.f32.vlgmr.msra.gmra.mxu3 %v1606_v38  ;;  %226 = vmatmul.f32.vlgmr.msrb.gmra.mxu0 %v1606_v38 }
  0xd1   :  { %246 = vmatmul.f32.vlgmr.msrb.gmra.mxu1 %v1606_v38  ;;  %454 = vmatpush.msra.mxu3 %v1243_v12 }
  0xd2   :  { %526 = vmatpush.msrb.mxu0 %v1172_v0  ;;  %546 = vmatpush.msrb.mxu1 %v1177_v1 }
  0xd3   :  { %455 = vmatpush.msra.mxu3 %v1251_v13 }
  0xd4   :  { %527 = vmatpush.msrb.mxu0 %v1182_v2  ;;  %547 = vmatpush.msrb.mxu1 %v1189_v3 }
  0xd5   :  { %456 = vmatpush.msra.mxu3 %v1270_v16 }
  0xd6   :  { %528 = vmatpush.msrb.mxu0 %v1194_v4  ;;  %548 = vmatpush.msrb.mxu1 %v1199_v5 }
  0xd7   :  { %457 = vmatpush.msra.mxu3 %v1289_v19 }
  0xd8   :  { %529 = vmatpush.msrb.mxu0 %v1207_v6  ;;  %549 = vmatpush.msrb.mxu1 %v1212_v7 }
  0xd9   :  { %458 = vmatpush.msra.mxu3 %v1308_v22 }
  0xda   :  { %530 = vmatpush.msrb.mxu0 %v1220_v8  ;;  %550 = vmatpush.msrb.mxu1 %v1225_v9 }
  0xdb   :  { %459 = vmatpush.msra.mxu3 %v1327_v25 }
  0xdc   :  { %531 = vmatpush.msrb.mxu0 %v1233_v10  ;;  %551 = vmatpush.msrb.mxu1 %v1238_v11 }
  0xdd   :  { %460 = vmatpush.msra.mxu3 %v1346_v28 }
  0xde   :  { %532 = vmatpush.msrb.mxu0 %v1256_v14  ;;  %552 = vmatpush.msrb.mxu1 %v1261_v15 }
  0xdf   :  { %461 = vmatpush.msra.mxu3 %v1365_v31 }
  0xe0   :  { %533 = vmatpush.msrb.mxu0 %v1275_v17  ;;  %553 = vmatpush.msrb.mxu1 %v1280_v18 }
  0xe1   :  { %462 = vmatpush.msra.mxu3 %v1384_v34 }
  0xe2   :  { %534 = vmatpush.msrb.mxu0 %v1294_v20  ;;  %554 = vmatpush.msrb.mxu1 %v1299_v21 }
  0xe3   :  { %463 = vmatpush.msra.mxu3 %v1403_v37 }
  0xe4   :  { %535 = vmatpush.msrb.mxu0 %v1313_v23  ;;  %555 = vmatpush.msrb.mxu1 %v1318_v24 }
  0xe5   :  { %464 = vmatpush.msra.mxu3 %v1422_v40 }
  0xe6   :  { %536 = vmatpush.msrb.mxu0 %v1332_v26  ;;  %556 = vmatpush.msrb.mxu1 %v1337_v27 }
  0xe7   :  { %465 = vmatpush.msra.mxu3 %v1442_v43 }
  0xe8   :  { %537 = vmatpush.msrb.mxu0 %v1351_v29  ;;  %557 = vmatpush.msrb.mxu1 %v1356_v30 }
  0xe9   :  { %466 = vmatpush.msra.mxu3 %v1450_v45 }
  0xea   :  { %538 = vmatpush.msrb.mxu0 %v1370_v32  ;;  %558 = vmatpush.msrb.mxu1 %v1375_v33 }
  0xeb   :  { %467 = vmatpush.msra.mxu3 %v1457_v46 }
  0xec   :  { %539 = vmatpush.msrb.mxu0 %v1389_v35  ;;  %559 = vmatpush.msrb.mxu1 %v1394_v36 }
  0xed   :  { %468 = vmatpush.msra.mxu3 %v1466_v47 }
  0xee   :  { %540 = vmatpush.msrb.mxu0 %v2147_v42  ;;  %560 = vmatpush.msrb.mxu1 %v2148_v48 }
  0xef   :  { %469 = vmatpush.msra.mxu3 %v2149_v51 }
  0xf0   :  { %541 = vmatpush.msrb.mxu0 %v2150_v57  ;;  %561 = vmatpush.msrb.mxu1 %v2151_v59 }
 0x14d   :  { %v227_v61 = vpop.f32.mrf.mxu0 }
 0x14e   :  { %v228_v39 = vadd.f32 %v227_v61, %v2152_v49 }
 0x150   :  { %v270_v62 = vadd.f32 %v978_v60, %v228_v39 }
 0x152   :  { %v981_v63 = vmul.f32 -1.442695, %v270_v62 }
 0x153   :  { %v207_v55 = vpop.f32.mrf.mxu3 }
 0x154   :  { %v208_v50 = vadd.f32 %v207_v55, %v2153_v54  ;;  %1030 = vpow2.f32 %v981_v63  ;;  %v247_v55 = vpop.f32.mrf.mxu1 }
 0x156   :  { %v250_v44 = vadd.f32 %v977_v53, %v208_v50 }
 0x158   :  { %v980_v41 = vmul.f32 -1.442695, %v250_v44  ;;  %v2154_v44 = vld [vmem:[#allocation11_spill] sm:$0xff] }
 0x15a   :  { %1032 = vpow2.f32 %v980_v41  ;;  %v1031_v52 = vpop.eup %1030  ;;  %v248_v41 = vadd.f32 %v247_v55, %v2154_v44 }
 0x15b   :  { %v274_v58 = vadd.f32 1.0, %v1031_v52 }
 0x15d   :  { %vm280_vm13 = vweird.f32 %v274_v58 }
 0x160   :  { %v1033_v56 = vpop.eup %1032 }
 0x161   :  { %v254_v59 = vadd.f32 1.0, %v1033_v56 }
 0x163   :  { %1034 = vrcp.f32 %v254_v59  ;;  %v266_v57 = vand.u32 2147483648, %v254_v59  ;;  %v264_v48 = vand.u32 2147483647, %v254_v59  ;;  %vm260_vm9 = vweird.f32 %v254_v59 }
 0x164   :  { %1036 = vrcp.f32 %v274_v58 }
 0x165   :  { %v267_v50 = vor.u32 1.1754944e-38, %v266_v57  ;;  %vm265_vm11 = vcmp.eq.f32.partialorder %v264_v48, 8.507059e+37 }
 0x169   :  { %v1035_v61 = vpop.eup %1034 }
 0x16a   :  { %v1037_v60 = vpop.eup %1036  ;;  %v256_v39 = vmul.f32 %v1035_v61, %v254_v59  ;;  %vm261_vm8 = vweird.f32 %v1035_v61  ;;  %v284_v59 = vand.u32 2147483647, %v274_v58 }
 0x16b   :  { %v276_v49 = vmul.f32 %v1037_v60, %v274_v58  ;;  %vm262_vm10 = vmor %vm260_vm9, %vm261_vm8  ;;  %vm281_vm12 = vweird.f32 %v1037_v60 }
 0x16c   :  { %v257_v62 = vsub.f32 1.0, %v256_v39  ;;  %v979_v39 = vld [vmem:[%s2118_s0 + $0x28] sm:$0xff]  ;;  %vm282_vm14 = vmor %vm280_vm13, %vm281_vm12  ;;  %vm285_vm15 = vcmp.eq.f32.partialorder %v284_v59, 8.507059e+37 }
 0x16d   :  { %v277_v63 = vsub.f32 1.0, %v276_v49 }
 0x16e   :  { %v258_v51 = vmul.f32 %v1035_v61, %v257_v62 }
 0x16f   :  { %v278_v42 = vmul.f32 %v1037_v60, %v277_v63 }
 0x170   :  { %v259_v53 = vadd.f32 %v1035_v61, %v258_v51  ;;  %v286_v51 = vand.u32 2147483648, %v274_v58 }
 0x171   :  { %v279_v47 = vadd.f32 %v1037_v60, %v278_v42 }
 0x172   :  { %v263_v52 = vsel %vm262_vm10, %v1035_v61, %v259_v53  ;;  %v287_v55 = vor.u32 1.1754944e-38, %v286_v51 }
 0x173   :  { %v268_v56 = vsel %vm265_vm11, %v267_v50, %v263_v52  ;;  %v283_v57 = vsel %vm282_vm14, %v1037_v60, %v279_v47  ;;  %v983_v47 = vld [vmem:[%s2118_s0 + $0x30] sm:$0xff] }
 0x174   :  { %v290_v54 = vmul.f32 %v268_v56, %v248_v41  ;;  %v288_v61 = vsel %vm285_vm15, %v287_v55, %v283_v57  ;;  %v2161_v60 = vld [vmem:[#allocation9_spill] sm:$0xff]  ;;  %v2162_v41 = vld [vmem:[#allocation10_spill] sm:$0xff] }
 0x176   :  { %v291_v62 = vadd.f32 %v979_v39, %v290_v54  ;;  %v984_v54 = vld [vmem:[%s2118_s0 + $0x38] sm:$0xff] }
 0x178   :  { %1038 = vtanh.f32 %v291_v62 }
 0x17e   :  { %v1039_v49 = vpop.eup %1038 }
 0x17f   :  { %v293_v48 = vsub.f32 %v1606_v38, %v1039_v49  ;;  %v2160_v38 = vld [vmem:[#allocation6_spill] sm:$0xff] }
 0x181   :  { %v294_v53 = vmul.f32 %v293_v48, %v288_v61 }
 0x183   :  { %v1676_v50 = vadd.f32 %v1039_v49, %v294_v53 }
 0x185   :  { %982 = vst [vmem:[%s2119_s3 + $0x8] sm:$0xff] %v1676_v50  ;;  %318 = vmatmul.f32.vlgmr.msrb.gmra.mxu2 %v1676_v50  ;;  %338 = vmatmul.f32.vlgmr.msrb.gmra.mxu3 %v1676_v50 }
 0x186   :  { %358 = vmatmul.f32.vlgmr.msra.gmra.mxu0 %v1676_v50  ;;  %566 = vmatpush.msrb.mxu2 %v1243_v12 }
 0x187   :  { %638 = vmatpush.msrb.mxu3 %v1172_v0  ;;  %658 = vmatpush.msra.mxu0 %v1177_v1  ;;  %v2155_v0 = vld [vmem:[#allocation7_spill] sm:$0xff] }
 0x188   :  { %567 = vmatpush.msrb.mxu2 %v1251_v13  ;;  %v2156_v1 = vld [vmem:[#allocation3_spill] sm:$0xff] }
 0x189   :  { %639 = vmatpush.msrb.mxu3 %v1182_v2  ;;  %659 = vmatpush.msra.mxu0 %v1189_v3  ;;  %v2157_v2 = vld [vmem:[#allocation4_spill] sm:$0xff] }
 0x18a   :  { %568 = vmatpush.msrb.mxu2 %v1270_v16 }
 0x18b   :  { %640 = vmatpush.msrb.mxu3 %v1194_v4  ;;  %660 = vmatpush.msra.mxu0 %v1199_v5  ;;  %v2158_v4 = vld [vmem:[#allocation8_spill] sm:$0xff]  ;;  %v2159_v5 = vld [vmem:[#allocation5_spill] sm:$0xff] }
 0x18c   :  { %569 = vmatpush.msrb.mxu2 %v1289_v19 }
 0x18d   :  { %641 = vmatpush.msrb.mxu3 %v1207_v6  ;;  %661 = vmatpush.msra.mxu0 %v1212_v7 }
 0x18e   :  { %570 = vmatpush.msrb.mxu2 %v1308_v22 }
 0x18f   :  { %642 = vmatpush.msrb.mxu3 %v1220_v8  ;;  %662 = vmatpush.msra.mxu0 %v1225_v9 }
 0x190   :  { %571 = vmatpush.msrb.mxu2 %v1327_v25 }
 0x191   :  { %643 = vmatpush.msrb.mxu3 %v1233_v10  ;;  %663 = vmatpush.msra.mxu0 %v1238_v11 }
 0x192   :  { %572 = vmatpush.msrb.mxu2 %v1346_v28 }
 0x193   :  { %644 = vmatpush.msrb.mxu3 %v1256_v14  ;;  %664 = vmatpush.msra.mxu0 %v1261_v15 }
 0x194   :  { %573 = vmatpush.msrb.mxu2 %v1365_v31 }
 0x195   :  { %645 = vmatpush.msrb.mxu3 %v1275_v17  ;;  %665 = vmatpush.msra.mxu0 %v1280_v18 }
 0x196   :  { %574 = vmatpush.msrb.mxu2 %v1384_v34 }
 0x197   :  { %646 = vmatpush.msrb.mxu3 %v1294_v20  ;;  %666 = vmatpush.msra.mxu0 %v1299_v21 }
 0x198   :  { %575 = vmatpush.msrb.mxu2 %v1403_v37 }
 0x199   :  { %647 = vmatpush.msrb.mxu3 %v1313_v23  ;;  %667 = vmatpush.msra.mxu0 %v1318_v24 }
 0x19a   :  { %576 = vmatpush.msrb.mxu2 %v1422_v40 }
 0x19b   :  { %648 = vmatpush.msrb.mxu3 %v1332_v26  ;;  %668 = vmatpush.msra.mxu0 %v1337_v27 }
 0x19c   :  { %577 = vmatpush.msrb.mxu2 %v1442_v43 }
 0x19d   :  { %649 = vmatpush.msrb.mxu3 %v1351_v29  ;;  %669 = vmatpush.msra.mxu0 %v1356_v30 }
 0x19e   :  { %578 = vmatpush.msrb.mxu2 %v1450_v45 }
 0x19f   :  { %650 = vmatpush.msrb.mxu3 %v1370_v32  ;;  %670 = vmatpush.msra.mxu0 %v1375_v33 }
 0x1a0   :  { %579 = vmatpush.msrb.mxu2 %v1457_v46 }
 0x1a1   :  { %651 = vmatpush.msrb.mxu3 %v1389_v35  ;;  %671 = vmatpush.msra.mxu0 %v1394_v36 }
 0x1a2   :  { %580 = vmatpush.msrb.mxu2 %v2155_v0 }
 0x1a3   :  { %652 = vmatpush.msrb.mxu3 %v2156_v1  ;;  %672 = vmatpush.msra.mxu0 %v2157_v2 }
 0x1a4   :  { %581 = vmatpush.msrb.mxu2 %v2158_v4 }
 0x1a5   :  { %653 = vmatpush.msrb.mxu3 %v2159_v5  ;;  %673 = vmatpush.msra.mxu0 %v2160_v38 }
 0x208   :  { %v319_v42 = vpop.f32.mrf.mxu2  ;;  %v339_v58 = vpop.f32.mrf.mxu3 }
 0x209   :  { %v320_v63 = vadd.f32 %v319_v42, %v2161_v60  ;;  %v340_v52 = vadd.f32 %v339_v58, %v2162_v41 }
 0x20b   :  { %v362_v56 = vadd.f32 %v983_v47, %v320_v63  ;;  %v382_v39 = vadd.f32 %v984_v54, %v340_v52  ;;  %v359_v54 = vpop.f32.mrf.mxu0 }
 0x20d   :  { %v986_v62 = vmul.f32 -1.442695, %v362_v56  ;;  %v987_v51 = vmul.f32 -1.442695, %v382_v39  ;;  %v360_v56 = vadd.f32 %v359_v54, %v2154_v44 }
 0x20f   :  { %1040 = vpow2.f32 %v986_v62 }
 0x210   :  { %1042 = vpow2.f32 %v987_v51  ;;  %v985_v51 = vld [vmem:[%s2118_s0 + $0x40] sm:$0xff] }
 0x215   :  { %v1041_v59 = vpop.eup %1040 }
 0x216   :  { %v1043_v57 = vpop.eup %1042  ;;  %v366_v49 = vadd.f32 1.0, %v1041_v59 }
 0x217   :  { %v386_v55 = vadd.f32 1.0, %v1043_v57 }
 0x218   :  { %1044 = vrcp.f32 %v366_v49  ;;  %v378_v5 = vand.u32 2147483648, %v366_v49  ;;  %v376_v47 = vand.u32 2147483647, %v366_v49  ;;  %vm372_vm1 = vweird.f32 %v366_v49 }
 0x219   :  { %1046 = vrcp.f32 %v386_v55  ;;  %vm392_vm5 = vweird.f32 %v386_v55 }
 0x21a   :  { %v379_v63 = vor.u32 1.1754944e-38, %v378_v5  ;;  %vm377_vm3 = vcmp.eq.f32.partialorder %v376_v47, 8.507059e+37 }
 0x21e   :  { %v1045_v48 = vpop.eup %1044 }
 0x21f   :  { %v1047_v61 = vpop.eup %1046  ;;  %v368_v53 = vmul.f32 %v1045_v48, %v366_v49  ;;  %vm373_vm0 = vweird.f32 %v1045_v48  ;;  %v396_v49 = vand.u32 2147483647, %v386_v55 }
 0x220   :  { %v388_v42 = vmul.f32 %v1047_v61, %v386_v55  ;;  %vm374_vm2 = vmor %vm372_vm1, %vm373_vm0  ;;  %vm393_vm4 = vweird.f32 %v1047_v61 }
 0x221   :  { %v369_v38 = vsub.f32 1.0, %v368_v53  ;;  %vm394_vm6 = vmor %vm392_vm5, %vm393_vm4  ;;  %vm397_vm7 = vcmp.eq.f32.partialorder %v396_v49, 8.507059e+37  ;;  %v1871_v49 = vld [vmem:[%s2116_s1 + $0x148] sm:$0xff] }
 0x222   :  { %v389_v52 = vsub.f32 1.0, %v388_v42 }
 0x223   :  { %v370_v60 = vmul.f32 %v1045_v48, %v369_v38 }
 0x224   :  { %v390_v57 = vmul.f32 %v1047_v61, %v389_v52 }
 0x225   :  { %v371_v58 = vadd.f32 %v1045_v48, %v370_v60  ;;  %v398_v60 = vand.u32 2147483648, %v386_v55  ;;  %v1765_v55 = vld [vmem:[%s2116_s1 + $0x170] sm:$0xff] }
 0x226   :  { %v391_v53 = vadd.f32 %v1047_v61, %v390_v57 }
 0x227   :  { %v375_v39 = vsel %vm374_vm2, %v1045_v48, %v371_v58  ;;  %v399_v54 = vor.u32 1.1754944e-38, %v398_v60  ;;  %v1107_v60 = vld [vmem:[%s2116_s1 + $0x158] sm:$0xff] }
 0x228   :  { %v380_v62 = vsel %vm377_vm3, %v379_v63, %v375_v39  ;;  %v395_v5 = vsel %vm394_vm6, %v1047_v61, %v391_v53  ;;  %v1780_v61 = vld [vmem:[%s2116_s1 + $0x138] sm:$0xff]  ;;  %v1861_v53 = vld [vmem:[%s2116_s1 + $0x160] sm:$0xff] }
 0x229   :  { %v402_v59 = vmul.f32 %v380_v62, %v360_v56  ;;  %v400_v47 = vsel %vm397_vm7, %v399_v54, %v395_v5  ;;  %v1879_v5 = vld [vmem:[%s2116_s1 + $0x130] sm:$0xff]  ;;  %v1111_v54 = vld [vmem:[%s2116_s1 + $0x128] sm:$0xff] }
 0x22b   :  { %v403_v38 = vadd.f32 %v985_v51, %v402_v59 }
 0x22d   :  { %1048 = vtanh.f32 %v403_v38  ;;  %v1853_v38 = vld [vmem:[%s2116_s1 + $0x178] sm:$0xff] }
 0x233   :  { %v1049_v42 = vpop.eup %1048 }
 0x234   :  { %v405_v48 = vsub.f32 %v1676_v50, %v1049_v42  ;;  %v1759_v50 = vld [vmem:[%s2116_s1 + $0x168] sm:$0xff] }
 0x236   :  { %v406_v58 = vmul.f32 %v405_v48, %v400_v47  ;;  %v1891_v48 = vld [vmem:[%s2116_s1 + $0x118] sm:$0xff]  ;;  %v1113_v47 = vld [vmem:[%s2116_s1 + $0x108] sm:$0xff] }
 0x238   :  { %v1746_v63 = vadd.f32 %v1049_v42, %v406_v58  ;;  %v1110_v42 = vld [vmem:[%s2116_s1 + $0x120] sm:$0xff]  ;;  %v1114_v58 = vld [vmem:[%s2116_s1 + $0x110] sm:$0xff] }
 0x23a   :  { %988 = vst [vmem:[%s2119_s3 + $0x10] sm:$0xff] %v1746_v63  ;;  %430 = vmatmul.f32.vlgmr.msra.gmra.mxu1 %v1746_v63  ;;  %450 = vmatmul.f32.vlgmr.msra.gmra.mxu2 %v1746_v63 }
 0x23b   :  { %470 = vmatmul.f32.vlgmr.msra.gmra.mxu3 %v1746_v63  ;;  %678 = vmatpush.msra.mxu1 %v1243_v12  ;;  %v1772_v12 = vld [vmem:[%s2116_s1 + $0x150] sm:$0xff] }
 0x23c   :  { %750 = vmatpush.msra.mxu2 %v1759_v50  ;;  %770 = vmatpush.msra.mxu3 %v1765_v55 }
 0x23d   :  { %679 = vmatpush.msra.mxu1 %v1251_v13  ;;  %v1786_v13 = vld [vmem:[%s2116_s1 + $0x140] sm:$0xff] }
 0x23e   :  { %751 = vmatpush.msra.mxu2 %v1772_v12  ;;  %771 = vmatpush.msra.mxu3 %v1189_v3  ;;  %v2163_v3 = vld [vmem:[#allocation5_spill] sm:$0xff] }
 0x23f   :  { %680 = vmatpush.msra.mxu1 %v1270_v16 }
 0x240   :  { %752 = vmatpush.msra.mxu2 %v1780_v61  ;;  %772 = vmatpush.msra.mxu3 %v1786_v13 }
 0x241   :  { %681 = vmatpush.msra.mxu1 %v1289_v19 }
 0x242   :  { %753 = vmatpush.msra.mxu2 %v1207_v6  ;;  %773 = vmatpush.msra.mxu3 %v1212_v7  ;;  %v2164_v6 = vld [vmem:[#allocation6_spill] sm:$0xff]  ;;  %v989_v7 = vld [vmem:[%s2118_s0 + $0x48] sm:$0xff] }
 0x243   :  { %682 = vmatpush.msra.mxu1 %v1308_v22 }
 0x244   :  { %754 = vmatpush.msra.mxu2 %v1220_v8  ;;  %774 = vmatpush.msra.mxu3 %v1225_v9  ;;  %v2165_v9 = vld [vmem:[#allocation9_spill] sm:$0xff] }
 0x245   :  { %683 = vmatpush.msra.mxu1 %v1327_v25 }
 0x246   :  { %755 = vmatpush.msra.mxu2 %v1233_v10  ;;  %775 = vmatpush.msra.mxu3 %v1238_v11 }
 0x247   :  { %684 = vmatpush.msra.mxu1 %v1346_v28 }
 0x248   :  { %756 = vmatpush.msra.mxu2 %v1256_v14  ;;  %776 = vmatpush.msra.mxu3 %v1261_v15  ;;  %v990_v15 = vld [vmem:[%s2118_s0 + $0x50] sm:$0xff] }
 0x249   :  { %685 = vmatpush.msra.mxu1 %v1365_v31 }
 0x24a   :  { %757 = vmatpush.msra.mxu2 %v1275_v17  ;;  %777 = vmatpush.msra.mxu3 %v1280_v18 }
 0x24b   :  { %686 = vmatpush.msra.mxu1 %v1384_v34 }
 0x24c   :  { %758 = vmatpush.msra.mxu2 %v1294_v20  ;;  %778 = vmatpush.msra.mxu3 %v1299_v21 }
 0x24d   :  { %687 = vmatpush.msra.mxu1 %v1403_v37 }
 0x24e   :  { %759 = vmatpush.msra.mxu2 %v1313_v23  ;;  %779 = vmatpush.msra.mxu3 %v1318_v24 }
 0x24f   :  { %688 = vmatpush.msra.mxu1 %v1422_v40  ;;  %v991_v40 = vld [vmem:[%s2118_s0 + $0x58] sm:$0xff] }
 0x250   :  { %760 = vmatpush.msra.mxu2 %v1332_v26  ;;  %780 = vmatpush.msra.mxu3 %v1337_v27 }
 0x251   :  { %689 = vmatpush.msra.mxu1 %v1442_v43 }
 0x252   :  { %761 = vmatpush.msra.mxu2 %v1351_v29  ;;  %781 = vmatpush.msra.mxu3 %v1356_v30 }
 0x253   :  { %690 = vmatpush.msra.mxu1 %v1450_v45 }
 0x254   :  { %762 = vmatpush.msra.mxu2 %v1370_v32  ;;  %782 = vmatpush.msra.mxu3 %v1375_v33 }
 0x255   :  { %691 = vmatpush.msra.mxu1 %v1457_v46 }
 0x256   :  { %763 = vmatpush.msra.mxu2 %v1389_v35  ;;  %783 = vmatpush.msra.mxu3 %v1394_v36 }
 0x257   :  { %692 = vmatpush.msra.mxu1 %v2155_v0 }
 0x258   :  { %764 = vmatpush.msra.mxu2 %v2156_v1  ;;  %784 = vmatpush.msra.mxu3 %v2157_v2 }
 0x259   :  { %693 = vmatpush.msra.mxu1 %v2158_v4 }
 0x25a   :  { %765 = vmatpush.msra.mxu2 %v2163_v3  ;;  %785 = vmatpush.msra.mxu3 %v2164_v6  ;;  %v1927_v3 = vld [vmem:[%s2116_s1 + $0xd0] sm:$0xff]  ;;  %v1122_v6 = vld [vmem:[%s2116_s1 + $0xc0] sm:$0xff] }
 0x2b7   :  { %v431_v8 = vpop.f32.mrf.mxu1 }
 0x2b8   :  { %v432_v10 = vadd.f32 %v431_v8, %v2165_v9  ;;  %v1939_v8 = vld [vmem:[%s2116_s1 + $0xb8] sm:$0xff] }
 0x2ba   :  { %v474_v11 = vadd.f32 %v989_v7, %v432_v10  ;;  %v1123_v7 = vld [vmem:[%s2116_s1 + $0xc8] sm:$0xff] }
 0x2bb   :  { %v1125_v10 = vld [vmem:[%s2116_s1 + $0xa8] sm:$0xff] }
 0x2bc   :  { %v992_v14 = vmul.f32 -1.442695, %v474_v11  ;;  %v1126_v11 = vld [vmem:[%s2116_s1 + $0xb0] sm:$0xff] }
 0x2bd   :  { %v451_v16 = vpop.f32.mrf.mxu2 }
 0x2be   :  { %1050 = vpow2.f32 %v992_v14  ;;  %v452_v17 = vadd.f32 %v451_v16, %v2162_v41  ;;  %v471_v31 = vpop.f32.mrf.mxu3  ;;  %v1951_v14 = vld [vmem:[%s2116_s1 + $0xa0] sm:$0xff]  ;;  %v1129_v16 = vld [vmem:[%s2116_s1 + $0x98] sm:$0xff] }
 0x2bf   :  { %v472_v36 = vadd.f32 %v471_v31, %v2154_v44  ;;  %v1144_v31 = vld [vmem:[%s2116_s1 + $0x20] sm:$0xff] }
 0x2c0   :  { %v494_v18 = vadd.f32 %v990_v15, %v452_v17  ;;  %v1128_v15 = vld [vmem:[%s2116_s1 + $0x90] sm:$0xff]  ;;  %v1963_v17 = vld [vmem:[%s2116_s1 + $0x88] sm:$0xff] }
 0x2c2   :  { %v993_v19 = vmul.f32 -1.442695, %v494_v18  ;;  %v1131_v18 = vld [vmem:[%s2116_s1 + $0x78] sm:$0xff] }
 0x2c4   :  { %v1051_v20 = vpop.eup %1050  ;;  %1052 = vpow2.f32 %v993_v19  ;;  %v1132_v19 = vld [vmem:[%s2116_s1 + $0x80] sm:$0xff] }
 0x2c5   :  { %v478_v21 = vadd.f32 1.0, %v1051_v20  ;;  %v1975_v20 = vld [vmem:[%s2116_s1 + $0x70] sm:$0xff] }
 0x2c7   :  { %1054 = vrcp.f32 %v478_v21  ;;  %v490_v27 = vand.u32 2147483648, %v478_v21  ;;  %v488_v29 = vand.u32 2147483647, %v478_v21  ;;  %vm484_vm9 = vweird.f32 %v478_v21 }
 0x2c9   :  { %v491_v34 = vor.u32 1.1754944e-38, %v490_v27  ;;  %vm489_vm11 = vcmp.eq.f32.partialorder %v488_v29, 8.507059e+37  ;;  %v1140_v27 = vld [vmem:[%s2116_s1 + $0x30] sm:$0xff]  ;;  %v2011_v29 = vld [vmem:[%s2116_s1 + $0x28] sm:$0xff] }
 0x2ca   :  { %v1053_v22 = vpop.eup %1052 }
 0x2cb   :  { %v498_v23 = vadd.f32 1.0, %v1053_v22  ;;  %v1135_v22 = vld [vmem:[%s2116_s1 + $0x68] sm:$0xff] }
 0x2cd   :  { %v1055_v24 = vpop.eup %1054  ;;  %1056 = vrcp.f32 %v498_v23  ;;  %v510_v2 = vand.u32 2147483648, %v498_v23  ;;  %vm504_vm13 = vweird.f32 %v498_v23  ;;  %v508_v4 = vand.u32 2147483647, %v498_v23 }
 0x2ce   :  { %v480_v25 = vmul.f32 %v1055_v24, %v478_v21  ;;  %vm485_vm8 = vweird.f32 %v1055_v24  ;;  %v1134_v21 = vld [vmem:[%s2116_s1 + $0x60] sm:$0xff] }
 0x2cf   :  { %vm486_vm10 = vmor %vm484_vm9, %vm485_vm8  ;;  %v511_v39 = vor.u32 1.1754944e-38, %v510_v2  ;;  %vm509_vm15 = vcmp.eq.f32.partialorder %v508_v4, 8.507059e+37 }
 0x2d0   :  { %v481_v26 = vsub.f32 1.0, %v480_v25  ;;  %v1138_v25 = vld [vmem:[%s2116_s1 + $0x50] sm:$0xff] }
 0x2d2   :  { %v482_v28 = vmul.f32 %v1055_v24, %v481_v26  ;;  %v1999_v26 = vld [vmem:[%s2116_s1 + $0x40] sm:$0xff] }
 0x2d3   :  { %v1057_v30 = vpop.eup %1056 }
 0x2d4   :  { %v500_v32 = vmul.f32 %v1057_v30, %v498_v23  ;;  %v483_v33 = vadd.f32 %v1055_v24, %v482_v28  ;;  %vm505_vm12 = vweird.f32 %v1057_v30  ;;  %v1987_v23 = vld [vmem:[%s2116_s1 + $0x58] sm:$0xff] }
 0x2d5   :  { %vm506_vm14 = vmor %vm504_vm13, %vm505_vm12  ;;  %v1141_v28 = vld [vmem:[%s2116_s1 + $0x38] sm:$0xff] }
 0x2d6   :  { %v501_v35 = vsub.f32 1.0, %v500_v32  ;;  %v487_v37 = vsel %vm486_vm10, %v1055_v24, %v483_v33  ;;  %v1137_v24 = vld [vmem:[%s2116_s1 + $0x48] sm:$0xff]  ;;  %v2023_v32 = vld [vmem:[%s2116_s1 + $0x10] sm:$0xff]  ;;  %v1146_v33 = vld [vmem:[%s2116_s1] sm:$0xff] }
 0x2d7   :  { %v492_v43 = vsel %vm489_vm11, %v491_v34, %v487_v37  ;;  %v1147_v34 = vld [vmem:[%s2116_s1 + $0x8] sm:$0xff] }
 0x2d8   :  { %v514_v45 = vmul.f32 %v492_v43, %v472_v36  ;;  %v502_v46 = vmul.f32 %v1057_v30, %v501_v35  ;;  %v995_v35 = vld [vmem:[%s2118_s0 + $0x60] sm:$0xff]  ;;  %v996_v37 = vld [vmem:[%s2118_s0 + $0x68] sm:$0xff] }
 0x2da   :  { %v515_v0 = vadd.f32 %v991_v40, %v514_v45  ;;  %v503_v1 = vadd.f32 %v1057_v30, %v502_v46 }
 0x2dc   :  { %1058 = vtanh.f32 %v515_v0  ;;  %v507_v52 = vsel %vm506_vm14, %v1057_v30, %v503_v1  ;;  %v1143_v30 = vld [vmem:[%s2116_s1 + $0x18] sm:$0xff] }
 0x2dd   :  { %v512_v51 = vsel %vm509_vm15, %v511_v39, %v507_v52 }
 0x2e2   :  { %v1059_v56 = vpop.eup %1058 }
 0x2e3   :  { %v517_v62 = vsub.f32 %v1746_v63, %v1059_v56  ;;  %v1903_v63 = vld [vmem:[%s2116_s1 + $0x100] sm:$0xff] }
 0x2e5   :  { %v518_v59 = vmul.f32 %v517_v62, %v512_v51 }
 0x2e7   :  { %v1841_v57 = vadd.f32 %v1059_v56, %v518_v59 }
 0x2e9   :  { %994 = vst [vmem:[%s2119_s3 + $0x18] sm:$0xff] %v1841_v57  ;;  %542 = vmatmul.f32.vlgmr.msrb.gmra.mxu0 %v1841_v57  ;;  %562 = vmatmul.f32.vlgmr.msrb.gmra.mxu1 %v1841_v57 }
 0x2ea   :  { %582 = vmatmul.f32.vlgmr.msrb.gmra.mxu2 %v1841_v57  ;;  %790 = vmatpush.msrb.mxu0 %v1853_v38 }
 0x2eb   :  { %862 = vmatpush.msrb.mxu1 %v1759_v50  ;;  %882 = vmatpush.msrb.mxu2 %v1765_v55  ;;  %v1116_v50 = vld [vmem:[%s2116_s1 + $0xf0] sm:$0xff]  ;;  %v1117_v55 = vld [vmem:[%s2116_s1 + $0xf8] sm:$0xff] }
 0x2ec   :  { %791 = vmatpush.msrb.mxu0 %v1861_v53 }
 0x2ed   :  { %863 = vmatpush.msrb.mxu1 %v1772_v12  ;;  %883 = vmatpush.msrb.mxu2 %v1107_v60  ;;  %v1915_v12 = vld [vmem:[%s2116_s1 + $0xe8] sm:$0xff] }
 0x2ee   :  { %792 = vmatpush.msrb.mxu0 %v1871_v49 }
 0x2ef   :  { %864 = vmatpush.msrb.mxu1 %v1780_v61  ;;  %884 = vmatpush.msrb.mxu2 %v1786_v13  ;;  %v1119_v61 = vld [vmem:[%s2116_s1 + $0xd8] sm:$0xff]  ;;  %v1120_v13 = vld [vmem:[%s2116_s1 + $0xe0] sm:$0xff] }
 0x2f0   :  { %793 = vmatpush.msrb.mxu0 %v1879_v5 }
 0x2f1   :  { %865 = vmatpush.msrb.mxu1 %v1110_v42  ;;  %885 = vmatpush.msrb.mxu2 %v1111_v54 }
 0x2f2   :  { %794 = vmatpush.msrb.mxu0 %v1891_v48 }
 0x2f3   :  { %866 = vmatpush.msrb.mxu1 %v1113_v47  ;;  %886 = vmatpush.msrb.mxu2 %v1114_v58 }
 0x2f4   :  { %795 = vmatpush.msrb.mxu0 %v1903_v63 }
 0x2f5   :  { %867 = vmatpush.msrb.mxu1 %v1116_v50  ;;  %887 = vmatpush.msrb.mxu2 %v1117_v55 }
 0x2f6   :  { %796 = vmatpush.msrb.mxu0 %v1915_v12 }
 0x2f7   :  { %868 = vmatpush.msrb.mxu1 %v1119_v61  ;;  %888 = vmatpush.msrb.mxu2 %v1120_v13 }
 0x2f8   :  { %797 = vmatpush.msrb.mxu0 %v1927_v3 }
 0x2f9   :  { %869 = vmatpush.msrb.mxu1 %v1122_v6  ;;  %889 = vmatpush.msrb.mxu2 %v1123_v7 }
 0x2fa   :  { %798 = vmatpush.msrb.mxu0 %v1939_v8 }
 0x2fb   :  { %870 = vmatpush.msrb.mxu1 %v1125_v10  ;;  %890 = vmatpush.msrb.mxu2 %v1126_v11  ;;  %v997_v10 = vld [vmem:[%s2118_s0 + $0x70] sm:$0xff] }
 0x2fc   :  { %799 = vmatpush.msrb.mxu0 %v1951_v14 }
 0x2fd   :  { %871 = vmatpush.msrb.mxu1 %v1128_v15  ;;  %891 = vmatpush.msrb.mxu2 %v1129_v16 }
 0x2fe   :  { %800 = vmatpush.msrb.mxu0 %v1963_v17 }
 0x2ff   :  { %872 = vmatpush.msrb.mxu1 %v1131_v18  ;;  %892 = vmatpush.msrb.mxu2 %v1132_v19 }
 0x300   :  { %801 = vmatpush.msrb.mxu0 %v1975_v20 }
 0x301   :  { %873 = vmatpush.msrb.mxu1 %v1134_v21  ;;  %893 = vmatpush.msrb.mxu2 %v1135_v22 }
 0x302   :  { %802 = vmatpush.msrb.mxu0 %v1987_v23 }
 0x303   :  { %874 = vmatpush.msrb.mxu1 %v1137_v24  ;;  %894 = vmatpush.msrb.mxu2 %v1138_v25 }
 0x304   :  { %803 = vmatpush.msrb.mxu0 %v1999_v26 }
 0x305   :  { %875 = vmatpush.msrb.mxu1 %v1140_v27  ;;  %895 = vmatpush.msrb.mxu2 %v1141_v28 }
 0x306   :  { %804 = vmatpush.msrb.mxu0 %v2011_v29 }
 0x307   :  { %876 = vmatpush.msrb.mxu1 %v1143_v30  ;;  %896 = vmatpush.msrb.mxu2 %v1144_v31 }
 0x308   :  { %805 = vmatpush.msrb.mxu0 %v2023_v32 }
 0x309   :  { %877 = vmatpush.msrb.mxu1 %v1146_v33  ;;  %897 = vmatpush.msrb.mxu2 %v1147_v34 }
 0x366   :  { %v543_v36 = vpop.f32.mrf.mxu0  ;;  %v563_v40 = vpop.f32.mrf.mxu1 }
 0x367   :  { %v544_v43 = vadd.f32 %v543_v36, %v2165_v9  ;;  %v564_v45 = vadd.f32 %v563_v40, %v2162_v41 }
 0x369   :  { %v586_v46 = vadd.f32 %v995_v35, %v544_v43  ;;  %v606_v0 = vadd.f32 %v996_v37, %v564_v45 }
 0x36b   :  { %v998_v1 = vmul.f32 -1.442695, %v586_v46  ;;  %v999_v2 = vmul.f32 -1.442695, %v606_v0 }
 0x36d   :  { %1060 = vpow2.f32 %v998_v1  ;;  %v583_v50 = vpop.f32.mrf.mxu2 }
 0x36e   :  { %1062 = vpow2.f32 %v999_v2  ;;  %v584_v6 = vadd.f32 %v583_v50, %v2154_v44 }
 0x373   :  { %v1061_v4 = vpop.eup %1060 }
 0x374   :  { %v1063_v52 = vpop.eup %1062  ;;  %v590_v56 = vadd.f32 1.0, %v1061_v4 }
 0x375   :  { %v610_v39 = vadd.f32 1.0, %v1063_v52  ;;  %v1003_v52 = vld [vmem:[%s2118_s0 + $0x88] sm:$0xff] }
 0x376   :  { %1064 = vrcp.f32 %v590_v56  ;;  %v602_v54 = vand.u32 2147483648, %v590_v56  ;;  %v600_v58 = vand.u32 2147483647, %v590_v56  ;;  %vm596_vm1 = vweird.f32 %v590_v56 }
 0x377   :  { %1066 = vrcp.f32 %v610_v39  ;;  %v622_v21 = vand.u32 2147483648, %v610_v39  ;;  %vm616_vm5 = vweird.f32 %v610_v39  ;;  %v620_v22 = vand.u32 2147483647, %v610_v39 }
 0x378   :  { %v603_v13 = vor.u32 1.1754944e-38, %v602_v54  ;;  %vm601_vm3 = vcmp.eq.f32.partialorder %v600_v58, 8.507059e+37 }
 0x379   :  { %v623_v27 = vor.u32 1.1754944e-38, %v622_v21  ;;  %vm621_vm7 = vcmp.eq.f32.partialorder %v620_v22, 8.507059e+37 }
 0x37c   :  { %v1065_v62 = vpop.eup %1064 }
 0x37d   :  { %v1067_v51 = vpop.eup %1066  ;;  %v592_v59 = vmul.f32 %v1065_v62, %v590_v56  ;;  %vm597_vm0 = vweird.f32 %v1065_v62 }
 0x37e   :  { %v612_v42 = vmul.f32 %v1067_v51, %v610_v39  ;;  %vm598_vm2 = vmor %vm596_vm1, %vm597_vm0  ;;  %vm617_vm4 = vweird.f32 %v1067_v51 }
 0x37f   :  { %v593_v60 = vsub.f32 1.0, %v592_v59  ;;  %vm618_vm6 = vmor %vm616_vm5, %vm617_vm4 }
 0x380   :  { %v613_v61 = vsub.f32 1.0, %v612_v42 }
 0x381   :  { %v594_v47 = vmul.f32 %v1065_v62, %v593_v60 }
 0x382   :  { %v614_v16 = vmul.f32 %v1067_v51, %v613_v61 }
 0x383   :  { %v595_v55 = vadd.f32 %v1065_v62, %v594_v47 }
 0x384   :  { %v615_v19 = vadd.f32 %v1067_v51, %v614_v16 }
 0x385   :  { %v599_v7 = vsel %vm598_vm2, %v1065_v62, %v595_v55 }
 0x386   :  { %v604_v11 = vsel %vm601_vm3, %v603_v13, %v599_v7  ;;  %v619_v24 = vsel %vm618_vm6, %v1067_v51, %v615_v19  ;;  %v1007_v13 = vld [vmem:[%s2118_s0 + $0x90] sm:$0xff]  ;;  %v1008_v7 = vld [vmem:[%s2118_s0 + $0x98] sm:$0xff] }
 0x387   :  { %v626_v15 = vmul.f32 %v604_v11, %v584_v6  ;;  %v624_v30 = vsel %vm621_vm7, %v623_v27, %v619_v24 }
 0x389   :  { %v627_v18 = vadd.f32 %v997_v10, %v626_v15 }
 0x38b   :  { %1068 = vtanh.f32 %v627_v18 }
 0x391   :  { %v1069_v25 = vpop.eup %1068 }
 0x392   :  { %v629_v28 = vsub.f32 %v1841_v57, %v1069_v25  ;;  %v1002_v57 = vld [vmem:[%s2118_s0 + $0x80] sm:$0xff] }
 0x394   :  { %v630_v31 = vmul.f32 %v629_v28, %v624_v30 }
 0x396   :  { %v2045_v33 = vadd.f32 %v1069_v25, %v630_v31 }
 0x398   :  { %1000 = vst [vmem:[%s2119_s3 + $0x20] sm:$0xff] %v2045_v33  ;;  %654 = vmatmul.f32.vlgmr.msrb.gmra.mxu3 %v2045_v33  ;;  %674 = vmatmul.f32.vlgmr.msra.gmra.mxu0 %v2045_v33 }
 0x399   :  { %694 = vmatmul.f32.vlgmr.msra.gmra.mxu1 %v2045_v33  ;;  %902 = vmatpush.msrb.mxu3 %v1853_v38 }
 0x39b   :  { %903 = vmatpush.msrb.mxu3 %v1861_v53 }
 0x39d   :  { %904 = vmatpush.msrb.mxu3 %v1871_v49 }
 0x39f   :  { %905 = vmatpush.msrb.mxu3 %v1879_v5 }
 0x3a1   :  { %906 = vmatpush.msrb.mxu3 %v1891_v48  ;;  %v1001_v48 = vld [vmem:[%s2118_s0 + $0x78] sm:$0xff] }
 0x3a3   :  { %907 = vmatpush.msrb.mxu3 %v1903_v63 }
 0x3a5   :  { %908 = vmatpush.msrb.mxu3 %v1915_v12 }
 0x3a7   :  { %909 = vmatpush.msrb.mxu3 %v1927_v3 }
 0x3a9   :  { %910 = vmatpush.msrb.mxu3 %v1939_v8 }
 0x3ab   :  { %911 = vmatpush.msrb.mxu3 %v1951_v14 }
 0x3ad   :  { %912 = vmatpush.msrb.mxu3 %v1963_v17 }
 0x3af   :  { %913 = vmatpush.msrb.mxu3 %v1975_v20 }
 0x3b1   :  { %914 = vmatpush.msrb.mxu3 %v1987_v23 }
 0x3b3   :  { %915 = vmatpush.msrb.mxu3 %v1999_v26 }
 0x3b5   :  { %916 = vmatpush.msrb.mxu3 %v2011_v29 }
 0x3b7   :  { %917 = vmatpush.msrb.mxu3 %v2023_v32 }
 0x415   :  { %v675_v38 = vpop.f32.mrf.mxu0 }
 0x416   :  { %v676_v53 = vadd.f32 %v675_v38, %v2162_v41  ;;  %v695_v43 = vpop.f32.mrf.mxu1 }
 0x417   :  { %v696_v1 = vadd.f32 %v695_v43, %v2154_v44 }
 0x418   :  { %v718_v49 = vadd.f32 %v1002_v57, %v676_v53 }
 0x41a   :  { %v1005_v5 = vmul.f32 -1.442695, %v718_v49 }
 0x41b   :  { %v655_v63 = vpop.f32.mrf.mxu3 }
 0x41c   :  { %v656_v12 = vadd.f32 %v655_v63, %v2165_v9  ;;  %1070 = vpow2.f32 %v1005_v5 }
 0x41e   :  { %v698_v3 = vadd.f32 %v1001_v48, %v656_v12 }
 0x420   :  { %v1004_v8 = vmul.f32 -1.442695, %v698_v3 }
 0x422   :  { %1072 = vpow2.f32 %v1004_v8  ;;  %v1071_v14 = vpop.eup %1070 }
 0x423   :  { %v722_v20 = vadd.f32 1.0, %v1071_v14 }
 0x425   :  { %v734_v59 = vand.u32 2147483648, %v722_v20  ;;  %vm728_vm13 = vweird.f32 %v722_v20  ;;  %v732_v60 = vand.u32 2147483647, %v722_v20 }
 0x427   :  { %v735_v47 = vor.u32 1.1754944e-38, %v734_v59  ;;  %vm733_vm15 = vcmp.eq.f32.partialorder %v732_v60, 8.507059e+37 }
 0x428   :  { %v1073_v17 = vpop.eup %1072 }
 0x429   :  { %v702_v23 = vadd.f32 1.0, %v1073_v17  ;;  %v1009_v17 = vld [vmem:[%s2118_s0 + $0xa0] sm:$0xff] }
 0x42b   :  { %1074 = vrcp.f32 %v702_v23  ;;  %v714_v36 = vand.u32 2147483648, %v702_v23  ;;  %v712_v40 = vand.u32 2147483647, %v702_v23  ;;  %vm708_vm9 = vweird.f32 %v702_v23 }
 0x42c   :  { %1076 = vrcp.f32 %v722_v20 }
 0x42d   :  { %v715_v0 = vor.u32 1.1754944e-38, %v714_v36  ;;  %vm713_vm11 = vcmp.eq.f32.partialorder %v712_v40, 8.507059e+37 }
 0x431   :  { %v1075_v26 = vpop.eup %1074 }
 0x432   :  { %v1077_v29 = vpop.eup %1076  ;;  %v704_v32 = vmul.f32 %v1075_v26, %v702_v23  ;;  %vm709_vm8 = vweird.f32 %v1075_v26 }
 0x433   :  { %v724_v35 = vmul.f32 %v1077_v29, %v722_v20  ;;  %vm710_vm10 = vmor %vm708_vm9, %vm709_vm8  ;;  %vm729_vm12 = vweird.f32 %v1077_v29 }
 0x434   :  { %v705_v34 = vsub.f32 1.0, %v704_v32  ;;  %vm730_vm14 = vmor %vm728_vm13, %vm729_vm12 }
 0x435   :  { %v725_v46 = vsub.f32 1.0, %v724_v35 }
 0x436   :  { %v706_v37 = vmul.f32 %v1075_v26, %v705_v34 }
 0x437   :  { %v726_v39 = vmul.f32 %v1077_v29, %v725_v46 }
 0x438   :  { %v707_v45 = vadd.f32 %v1075_v26, %v706_v37 }
 0x439   :  { %v727_v51 = vadd.f32 %v1077_v29, %v726_v39 }
 0x43a   :  { %v711_v2 = vsel %vm710_vm10, %v1075_v26, %v707_v45 }
 0x43b   :  { %v716_v4 = vsel %vm713_vm11, %v715_v0, %v711_v2  ;;  %v731_v42 = vsel %vm730_vm14, %v1077_v29, %v727_v51  ;;  %v1013_v0 = vld [vmem:[%s2118_s0 + $0xa8] sm:$0xff] }
 0x43c   :  { %v738_v56 = vmul.f32 %v716_v4, %v696_v1  ;;  %v736_v50 = vsel %vm733_vm15, %v735_v47, %v731_v42 }
 0x43e   :  { %v739_v62 = vadd.f32 %v1003_v52, %v738_v56  ;;  %v1014_v56 = vld [vmem:[%s2118_s0 + $0xb0] sm:$0xff] }
 0x440   :  { %1078 = vtanh.f32 %v739_v62 }
 0x446   :  { %v1079_v54 = vpop.eup %1078 }
 0x447   :  { %v741_v58 = vsub.f32 %v2045_v33, %v1079_v54 }
 0x449   :  { %v742_v55 = vmul.f32 %v741_v58, %v736_v50 }
 0x44b   :  { %v743_v61 = vadd.f32 %v1079_v54, %v742_v55 }
 0x44d   :  { %1006 = vst [vmem:[%s2119_s3 + $0x28] sm:$0xff] %v743_v61  ;;  %766 = vmatmul.f32.vlgmr.msra.gmra.mxu2 %v743_v61  ;;  %786 = vmatmul.f32.vlgmr.msra.gmra.mxu3 %v743_v61 }
 0x44e   :  { %806 = vmatmul.f32.vlgmr.msrb.gmra.mxu0 %v743_v61 }
 0x4cb   :  { %v807_v5 = vpop.f32.mrf.mxu0 }
 0x4cc   :  { %v808_v3 = vadd.f32 %v807_v5, %v2154_v44 }
 0x4d0   :  { %v767_v6 = vpop.f32.mrf.mxu2  ;;  %v787_v10 = vpop.f32.mrf.mxu3 }
 0x4d1   :  { %v768_v11 = vadd.f32 %v767_v6, %v2165_v9  ;;  %v788_v15 = vadd.f32 %v787_v10, %v2162_v41 }
 0x4d3   :  { %v810_v16 = vadd.f32 %v1007_v13, %v768_v11  ;;  %v830_v18 = vadd.f32 %v1008_v7, %v788_v15 }
 0x4d5   :  { %v1010_v19 = vmul.f32 -1.442695, %v810_v16  ;;  %v1011_v21 = vmul.f32 -1.442695, %v830_v18 }
 0x4d7   :  { %1080 = vpow2.f32 %v1010_v19  ;;  %v1015_v19 = vld [vmem:[%s2118_s0 + $0xb8] sm:$0xff] }
 0x4d8   :  { %1082 = vpow2.f32 %v1011_v21 }
 0x4dd   :  { %v1081_v22 = vpop.eup %1080 }
 0x4de   :  { %v1083_v24 = vpop.eup %1082  ;;  %v814_v25 = vadd.f32 1.0, %v1081_v22 }
 0x4df   :  { %v834_v27 = vadd.f32 1.0, %v1083_v24 }
 0x4e0   :  { %1084 = vrcp.f32 %v814_v25  ;;  %v826_v57 = vand.u32 2147483648, %v814_v25  ;;  %v824_v49 = vand.u32 2147483647, %v814_v25  ;;  %vm820_vm1 = vweird.f32 %v814_v25 }
 0x4e1   :  { %1086 = vrcp.f32 %v834_v27  ;;  %v846_v32 = vand.u32 2147483648, %v834_v27  ;;  %vm840_vm5 = vweird.f32 %v834_v27  ;;  %v844_v34 = vand.u32 2147483647, %v834_v27 }
 0x4e2   :  { %v827_v63 = vor.u32 1.1754944e-38, %v826_v57  ;;  %vm825_vm3 = vcmp.eq.f32.partialorder %v824_v49, 8.507059e+37 }
 0x4e3   :  { %v847_v37 = vor.u32 1.1754944e-38, %v846_v32  ;;  %vm845_vm7 = vcmp.eq.f32.partialorder %v844_v34, 8.507059e+37 }
 0x4e6   :  { %v1085_v28 = vpop.eup %1084 }
 0x4e7   :  { %v1087_v30 = vpop.eup %1086  ;;  %v816_v31 = vmul.f32 %v1085_v28, %v814_v25  ;;  %vm821_vm0 = vweird.f32 %v1085_v28 }
 0x4e8   :  { %v836_v38 = vmul.f32 %v1087_v30, %v834_v27  ;;  %vm822_vm2 = vmor %vm820_vm1, %vm821_vm0  ;;  %vm841_vm4 = vweird.f32 %v1087_v30 }
 0x4e9   :  { %v817_v33 = vsub.f32 1.0, %v816_v31  ;;  %vm842_vm6 = vmor %vm840_vm5, %vm841_vm4 }
 0x4ea   :  { %v837_v12 = vsub.f32 1.0, %v836_v38 }
 0x4eb   :  { %v818_v53 = vmul.f32 %v1085_v28, %v817_v33 }
 0x4ec   :  { %v838_v23 = vmul.f32 %v1087_v30, %v837_v12 }
 0x4ed   :  { %v819_v48 = vadd.f32 %v1085_v28, %v818_v53 }
 0x4ee   :  { %v839_v29 = vadd.f32 %v1087_v30, %v838_v23 }
 0x4ef   :  { %v823_v8 = vsel %vm822_vm2, %v1085_v28, %v819_v48 }
 0x4f0   :  { %v828_v14 = vsel %vm825_vm3, %v827_v63, %v823_v8  ;;  %v843_v35 = vsel %vm842_vm6, %v1087_v30, %v839_v29 }
 0x4f1   :  { %v850_v20 = vmul.f32 %v828_v14, %v808_v3  ;;  %v848_v43 = vsel %vm845_vm7, %v847_v37, %v843_v35 }
 0x4f3   :  { %v851_v26 = vadd.f32 %v1009_v17, %v850_v20 }
 0x4f5   :  { %1088 = vtanh.f32 %v851_v26 }
 0x4fb   :  { %v1089_v36 = vpop.eup %1088 }
 0x4fc   :  { %v853_v40 = vsub.f32 %v743_v61, %v1089_v36 }
 0x4fe   :  { %v854_v45 = vmul.f32 %v853_v40, %v848_v43 }
 0x500   :  { %v855_v46 = vadd.f32 %v1089_v36, %v854_v45 }
 0x502   :  { %1012 = vst [vmem:[%s2119_s3 + $0x30] sm:$0xff] %v855_v46  ;;  %878 = vmatmul.f32.vlgmr.msrb.gmra.mxu1 %v855_v46  ;;  %898 = vmatmul.f32.vlgmr.msrb.gmra.mxu2 %v855_v46 }
 0x503   :  { %918 = vmatmul.f32.vlgmr.msrb.gmra.mxu3 %v855_v46 }
 0x57f   :  { %v879_v1 = vpop.f32.mrf.mxu1 }
 0x580   :  { %v880_v2 = vadd.f32 %v879_v1, %v2165_v9 }
 0x582   :  { %v922_v4 = vadd.f32 %v1013_v0, %v880_v2 }
 0x584   :  { %v1016_v52 = vmul.f32 -1.442695, %v922_v4 }
 0x585   :  { %v899_v39 = vpop.f32.mrf.mxu2 }
 0x586   :  { %1090 = vpow2.f32 %v1016_v52  ;;  %v900_v62 = vadd.f32 %v899_v39, %v2162_v41  ;;  %v919_v7 = vpop.f32.mrf.mxu3 }
 0x587   :  { %v920_v16 = vadd.f32 %v919_v7, %v2154_v44 }
 0x588   :  { %v942_v51 = vadd.f32 %v1014_v56, %v900_v62 }
 0x58a   :  { %v1017_v59 = vmul.f32 -1.442695, %v942_v51 }
 0x58c   :  { %v1091_v60 = vpop.eup %1090  ;;  %1092 = vpow2.f32 %v1017_v59 }
 0x58d   :  { %v926_v42 = vadd.f32 1.0, %v1091_v60 }
 0x58f   :  { %1094 = vrcp.f32 %v926_v42  ;;  %v938_v55 = vand.u32 2147483648, %v926_v42  ;;  %v936_v13 = vand.u32 2147483647, %v926_v42  ;;  %vm932_vm9 = vweird.f32 %v926_v42 }
 0x591   :  { %v939_v11 = vor.u32 1.1754944e-38, %v938_v55  ;;  %vm937_vm11 = vcmp.eq.f32.partialorder %v936_v13, 8.507059e+37 }
 0x592   :  { %v1093_v54 = vpop.eup %1092 }
 0x593   :  { %v946_v47 = vadd.f32 1.0, %v1093_v54 }
 0x595   :  { %v1095_v58 = vpop.eup %1094  ;;  %1096 = vrcp.f32 %v946_v47  ;;  %v958_v28 = vand.u32 2147483648, %v946_v47  ;;  %vm952_vm13 = vweird.f32 %v946_v47  ;;  %v956_v30 = vand.u32 2147483647, %v946_v47 }
 0x596   :  { %v928_v9 = vmul.f32 %v1095_v58, %v926_v42  ;;  %vm933_vm8 = vweird.f32 %v1095_v58 }
 0x597   :  { %vm934_vm10 = vmor %vm932_vm9, %vm933_vm8  ;;  %v959_v44 = vor.u32 1.1754944e-38, %v958_v28  ;;  %vm957_vm15 = vcmp.eq.f32.partialorder %v956_v30, 8.507059e+37 }
 0x598   :  { %v929_v50 = vsub.f32 1.0, %v928_v9 }
 0x59a   :  { %v930_v61 = vmul.f32 %v1095_v58, %v929_v50 }
 0x59b   :  { %v1097_v6 = vpop.eup %1096 }
 0x59c   :  { %v948_v10 = vmul.f32 %v1097_v6, %v946_v47  ;;  %v931_v41 = vadd.f32 %v1095_v58, %v930_v61  ;;  %vm953_vm12 = vweird.f32 %v1097_v6 }
 0x59d   :  { %vm954_vm14 = vmor %vm952_vm13, %vm953_vm12 }
 0x59e   :  { %v949_v15 = vsub.f32 1.0, %v948_v10  ;;  %v935_v18 = vsel %vm934_vm10, %v1095_v58, %v931_v41 }
 0x59f   :  { %v940_v21 = vsel %vm937_vm11, %v939_v11, %v935_v18 }
 0x5a0   :  { %v962_v22 = vmul.f32 %v940_v21, %v920_v16  ;;  %v950_v24 = vmul.f32 %v1097_v6, %v949_v15 }
 0x5a2   :  { %v963_v25 = vadd.f32 %v1015_v19, %v962_v22  ;;  %v951_v27 = vadd.f32 %v1097_v6, %v950_v24 }
 0x5a4   :  { %1098 = vtanh.f32 %v963_v25  ;;  %v955_v31 = vsel %vm954_vm14, %v1097_v6, %v951_v27 }
 0x5a5   :  { %v960_v38 = vsel %vm957_vm15, %v959_v44, %v955_v31 }
 0x5aa   :  { %v1099_v33 = vpop.eup %1098 }
 0x5ab   :  { %v965_v57 = vsub.f32 %v855_v46, %v1099_v33 }
 0x5ad   :  { %v966_v53 = vmul.f32 %v965_v57, %v960_v38 }
 0x5af   :  { %v967_v49 = vadd.f32 %v1099_v33, %v966_v53 }
 0x5b1   :  { %1018 = vst [vmem:[%s2119_s3 + $0x38] sm:$0xff] %v967_v49 }

</bundles_post_ra>
